<compile_context>
chip_gen: v7x
topology: tpu7x:2x2x1
jax: 0.10.0
libtpu: 0.0.40
codegen_flags: <defaults>
</compile_context>

<pallas_src>
import jax
import jax.numpy as jnp
from jax.experimental import pallas as pl
from jax.experimental.pallas import tpu as pltpu


def _phase_weights(w_hwio):
    """Fold the nearest-2x upsample into four 2x2 sub-pixel-phase filters.

    Returns (4, 4, C_in, C_out) with [phase p = 2a+b, tap k = 2r+s] such that
        y[2i+a, 2j+b] = sum_{r,s in {0,1}} xpad[i+a+r, j+b+s] @ W[p, 2r+s]
    where xpad is the original-resolution input zero-padded by 1 pixel.
    Pure adds -> exact in f32.
    """
    row_taps = {0: (w_hwio[0], w_hwio[1] + w_hwio[2]),
                1: (w_hwio[0] + w_hwio[1], w_hwio[2])}
    phases = []
    for a in range(2):
        for b in range(2):
            taps = []
            for r in range(2):
                v = row_taps[a][r]                  # (3, C_in, C_out), axis 0 = kx
                if b == 0:
                    taps.extend((v[0], v[1] + v[2]))
                else:
                    taps.extend((v[0] + v[1], v[2]))
            phases.append(jnp.stack(taps, axis=0))  # (4, C_in, C_out), k = 2r+s
    return jnp.stack(phases, axis=0)                # (4, 4, C_in, C_out)


def _vmem_budget():
    """Generation-aware VMEM limit + tile budget (v7x has only 64 MiB/TC)."""
    cap = 64 * 1024 * 1024                    # conservative fallback (= v7x)
    try:
        cap = int(pltpu.get_tpu_info().vmem_capacity_bytes)
    except Exception:
        pass
    # v5e/v6e (128 MiB) -> 112 MiB limit; v7x (64 MiB) -> 56 MiB limit.
    limit = max(min(cap - 8 * 1024 * 1024, 112 * 1024 * 1024), 16 * 1024 * 1024)
    tile_budget = max(limit - 8 * 1024 * 1024, 8 * 1024 * 1024)  # Mosaic headroom
    return limit, tile_budget


def _pick_row_tile(h, w, c, cdt_size, store_size, budget, fuse_k):
    """Largest TH whose per-step VMEM footprint fits `budget`.

    Accounts for: double-buffered input block, double-buffered 4-phase output
    block, the (double-buffered) weight block, two live column-shifted temps,
    the fused-K concat temp, and the f32 accumulator + bias broadcast.
    """
    wpad = w + 2
    per_row = (2 * wpad * c * cdt_size                      # input block x2 bufs
               + 2 * 4 * w * c * store_size                 # output block x2 bufs
               + 2 * w * c * cdt_size                       # 2 live column temps
               + (4 * w * c * cdt_size if fuse_k else 0)    # concat temp
               + 2 * w * c * 4)                             # f32 acc + bias bcast
    fixed = (2 * 2 * wpad * c * cdt_size                    # +2 halo rows (input)
             + 2 * 2 * w * c * cdt_size                     # +2 halo rows (col temps)
             + 2 * 16 * c * c * cdt_size                    # weight block x2 bufs
             + 4 * 1024)                                    # bias + misc
    th = (budget - fixed) // per_row
    return int(max(1, min(th, h)))


def _make_kernel(fuse_k):
    def kernel(x_ref, w_ref, b_ref, o_ref):
        # x_ref: (1, 1, TH+2, W+2, C)  haloed row-slab of the zero-padded input
        # w_ref: (4, 4C, C) if fuse_k else (4, 4, C, C)   per-phase filters
        # b_ref: (1, C) f32 bias
        # o_ref: (1, 4, TH, W, C)      phase-separated output tile
        th, wd, c = o_ref.shape[2], o_ref.shape[3], o_ref.shape[4]

        slab = x_ref.at[0, 0]                               # (TH+2, W+2, C) view
        # Hoist the bias broadcast (JAX does not CSE broadcast_in_dim in loops);
        # it also seeds the accumulator so there is no extra zeros-init pass.
        bias = jnp.broadcast_to(b_ref[...].astype(jnp.float32), (th * wd, c))

        for b in range(2):
            # Only these column-shifted loads cross sublane boundaries; keep
            # just the two needed for this column phase live.
            col0 = slab[:, b:b + wd, :]                      # (TH+2, W, C)
            col1 = slab[:, b + 1:b + 1 + wd, :]              # (TH+2, W, C)
            for a in range(2):
                p = 2 * a + b
                taps = (col0[a:a + th], col1[a:a + th],          # k = 0, 1
                        col0[a + 1:a + 1 + th], col1[a + 1:a + 1 + th])  # k = 2, 3
                if fuse_k:
                    # One long-K MXU dot: K = 4C (lane-aligned concat).
                    cat = jnp.concatenate(taps, axis=-1).reshape(th * wd, 4 * c)
                    acc = bias + jnp.dot(cat, w_ref[p],
                                         preferred_element_type=jnp.float32)
                else:
                    acc = bias
                    for k, patch in enumerate(taps):
                        acc = acc + jnp.dot(patch.reshape(th * wd, c), w_ref[p, k],
                                            preferred_element_type=jnp.float32)
                o_ref[0, p] = acc.reshape(th, wd, c).astype(o_ref.dtype)
    return kernel


def upsample_forward(x_nchw, w_oihw, bias, *, row_tile=None,
                     compute_dtype=jnp.bfloat16):
    """Equivalent of Upsample.forward.  x_nchw: (N, C, H, W)."""
    N, C, H, W = x_nchw.shape
    out_dtype = jnp.dtype(x_nchw.dtype)
    cdt = jnp.dtype(compute_dtype)
    store_dtype = cdt                       # bf16 output slab halves epilogue HBM
    fuse_k = (C % 128 == 0)                 # lane-aligned long-K path (production)

    vmem_limit, tile_budget = _vmem_budget()
    if row_tile is None:
        th = _pick_row_tile(H, W, C, cdt.itemsize, jnp.dtype(store_dtype).itemsize,
                            tile_budget, fuse_k)
        if N == 1:
            # v7x megacore: guarantee >= 2 parallel row tiles when batch == 1.
            th = min(th, -(-H // 2))
    else:
        th = int(row_tile)
    th = max(1, min(th, H))
    h_t = -(-H // th) * th
    n_tiles = h_t // th
    wpad = W + 2

    # NCHW -> NHWC (channels on the lane/MXU axis), 1-px zero pad at ORIGINAL
    # resolution, then gather overlapping (TH+2)-row slabs so the kernel does
    # no in-VMEM slab assembly and needs no scratch.  The (h_t - H) extra zero
    # rows only produce output rows that are sliced away below.
    x = jnp.transpose(x_nchw, (0, 2, 3, 1)).astype(cdt)
    xp = jnp.pad(x, ((0, 0), (1, 1 + (h_t - H)), (1, 1), (0, 0)))
    row_idx = jnp.arange(n_tiles)[:, None] * th + jnp.arange(th + 2)[None, :]
    xg = jnp.take(xp, row_idx, axis=1)      # (N, n_tiles, TH+2, W+2, C)

    # OIHW -> HWIO, fold the 2x nearest upsample into per-phase filters (exact
    # f32 adds), then cast to the compute dtype for the MXU.
    w_hwio = jnp.transpose(w_oihw, (2, 3, 1, 0)).astype(jnp.float32)
    wp4 = _phase_weights(w_hwio).astype(cdt)        # (4, 4, C, C), tap k = 2r+s
    wp = wp4.reshape(4, 4 * C, C) if fuse_k else wp4
    b2d = bias.reshape(1, C).astype(jnp.float32)

    # Weight/bias block indices are constant, so Pallas DMAs them only once;
    # the second pipeline buffer only costs VMEM capacity, which the tile
    # picker accounts for (pl.Buffered(1) would reclaim it on newer runtimes).
    if fuse_k:
        w_spec = pl.BlockSpec((4, 4 * C, C), lambda n, t: (0, 0, 0))
    else:
        w_spec = pl.BlockSpec((4, 4, C, C), lambda n, t: (0, 0, 0, 0))

    out_ph = pl.pallas_call(
        _make_kernel(fuse_k),
        out_shape=jax.ShapeDtypeStruct((N, 4, h_t, W, C), store_dtype),
        grid=(N, n_tiles),
        in_specs=[
            pl.BlockSpec((1, 1, th + 2, wpad, C), lambda n, t: (n, t, 0, 0, 0)),
            w_spec,
            pl.BlockSpec((1, C), lambda n, t: (0, 0)),
        ],
        out_specs=pl.BlockSpec((1, 4, th, W, C), lambda n, t: (n, 0, t, 0, 0)),
        compiler_params=pltpu.CompilerParams(
            dimension_semantics=("parallel", "parallel"),
            vmem_limit_bytes=vmem_limit),
    )(xg, wp, b2d)

    # Drop padded rows, then un-interleave the 4 sub-pixel phases fused with
    # the NHWC -> NCHW layout change and the final dtype cast: a single pass
    # over the 4x-sized output (in bf16 when compute_dtype is bf16).
    out6 = out_ph[:, :, :H].reshape(N, 2, 2, H, W, C)
    return jnp.transpose(out6, (0, 5, 3, 1, 4, 2)).reshape(
        N, C, 2 * H, 2 * W).astype(out_dtype)


def _reference_forward(x_nchw, w_oihw, bias):
    """Pure-JAX reference (nearest 2x upsample + SAME 3x3 conv) in NCHW."""
    x = jnp.repeat(jnp.repeat(x_nchw, 2, axis=2), 2, axis=3)
    y = jax.lax.conv_general_dilated(
        x, w_oihw, window_strides=(1, 1), padding="SAME",
        dimension_numbers=("NCHW", "OIHW", "NCHW"))
    return y + bias.reshape(1, -1, 1, 1)


if __name__ == "__main__":
    key = jax.random.PRNGKey(0)
    k1, k2, k3, k4, k5, k6 = jax.random.split(key, 6)

    # ---- Config 1: f32 compute path, tiny C (unfused taps), grid (2, 2) ----
    N, C, H, W = 2, 4, 16, 16
    x = jax.random.normal(k1, (N, C, H, W), dtype=jnp.float32)
    bound = 1.0 / ((C * 9) ** 0.5)          # PyTorch-default Conv2d init bounds
    w_oihw = jax.random.uniform(k2, (C, C, 3, 3), jnp.float32, -bound, bound)
    b = jax.random.uniform(k3, (C,), jnp.float32, -bound, bound)

    fwd_f32 = jax.jit(lambda a, w, bb: upsample_forward(
        a, w, bb, row_tile=8, compute_dtype=jnp.float32))
    out = jax.block_until_ready(fwd_f32(x, w_oihw, b))
    ref = _reference_forward(x, w_oihw, b)
    assert out.shape == (N, C, 2 * H, 2 * W), out.shape
    assert out.dtype == x.dtype
    err = float(jnp.max(jnp.abs(out - ref)))
    assert jnp.allclose(out, ref, atol=2e-4, rtol=2e-4), err

    # ---- Config 2: default bf16 production path, fused long-K (C=128), N=1 ----
    N2, C2, H2, W2 = 1, 128, 8, 8
    x2 = jax.random.normal(k4, (N2, C2, H2, W2), dtype=jnp.float32)
    bound2 = 1.0 / ((C2 * 9) ** 0.5)
    w2 = jax.random.uniform(k5, (C2, C2, 3, 3), jnp.float32, -bound2, bound2)
    b2 = jax.random.uniform(k6, (C2,), jnp.float32, -bound2, bound2)

    fwd_bf16 = jax.jit(lambda a, w, bb: upsample_forward(a, w, bb))
    out2 = jax.block_until_ready(fwd_bf16(x2, w2, b2))
    ref2 = _reference_forward(x2, w2, b2)
    assert out2.shape == (N2, C2, 2 * H2, 2 * W2), out2.shape
    err2 = float(jnp.max(jnp.abs(out2 - ref2)))
    assert err2 < 0.1, err2                 # bf16 inputs/weights, f32 accumulation

    print("KERNEL_OK")
</pallas_src>

<mosaic_0001>
module attributes {stable_mosaic.version = 11 : i64} {
  func.func @kernel(%arg0: i32, %arg1: i32, %arg2: memref<1x1x10x18x4xf32, #tpu.memory_space<vmem>>, %arg3: memref<4x4x4x4xf32, #tpu.memory_space<vmem>>, %arg4: memref<1x4xf32, #tpu.memory_space<vmem>>, %arg5: memref<1x4x8x16x4xf32, #tpu.memory_space<vmem>>) attributes {dimension_semantics = [#tpu.dimension_semantics<parallel>, #tpu.dimension_semantics<parallel>], iteration_bounds = array<i64: 2, 2>, scalar_prefetch = 0 : i64, scratch_operands = 0 : i64, tpu.core_type = #tpu.core_type<tc>, window_params = [{transform_indices = @transform_0, window_bounds = array<i64: 1, 1, 10, 18, 4>}, {pipeline_mode = #tpu.pipeline_mode<synchronous>, transform_indices = @transform_1, window_bounds = array<i64: 4, 4, 4, 4>}, {pipeline_mode = #tpu.pipeline_mode<synchronous>, transform_indices = @transform_2, window_bounds = array<i64: 1, 4>}, {transform_indices = @transform_3, window_bounds = array<i64: 1, 4, 8, 16, 4>}]} {
    %c0 = arith.constant 0 : index
    %c0_0 = arith.constant 0 : index
    %0 = vector.load %arg4[%c0, %c0_0] : memref<1x4xf32, #tpu.memory_space<vmem>>, vector<1x4xf32>
    %1 = vector.shape_cast %0 : vector<1x4xf32> to vector<1x4xf32>
    %2 = vector.broadcast %1 : vector<1x4xf32> to vector<128x4xf32>
    %c0_i32 = arith.constant 0 : i32
    %c0_i32_1 = arith.constant 0 : i32
    %c0_i32_2 = arith.constant 0 : i32
    %c0_i32_3 = arith.constant 0 : i32
    %c0_i32_4 = arith.constant 0 : i32
    %3 = tpu.memref_slice %arg2[%c0_i32, %c0_i32_1, %c0_i32_2, %c0_i32_3, %c0_i32_4] : memref<1x1x10x18x4xf32, #tpu.memory_space<vmem>> -> memref<1x1x10x18x4xf32, #tpu.memory_space<vmem>>
    %4 = tpu.memref_squeeze %3 : memref<1x1x10x18x4xf32, #tpu.memory_space<vmem>> -> memref<10x18x4xf32, #tpu.memory_space<vmem>>
    %c0_5 = arith.constant 0 : index
    %c0_6 = arith.constant 0 : index
    %c0_7 = arith.constant 0 : index
    %5 = vector.load %4[%c0_5, %c0_6, %c0_7] : memref<10x18x4xf32, #tpu.memory_space<vmem>>, vector<10x16x4xf32>
    %c0_i32_8 = arith.constant 0 : i32
    %c0_i32_9 = arith.constant 0 : i32
    %c0_i32_10 = arith.constant 0 : i32
    %c0_i32_11 = arith.constant 0 : i32
    %c0_i32_12 = arith.constant 0 : i32
    %6 = tpu.memref_slice %arg2[%c0_i32_8, %c0_i32_9, %c0_i32_10, %c0_i32_11, %c0_i32_12] : memref<1x1x10x18x4xf32, #tpu.memory_space<vmem>> -> memref<1x1x10x18x4xf32, #tpu.memory_space<vmem>>
    %7 = tpu.memref_squeeze %6 : memref<1x1x10x18x4xf32, #tpu.memory_space<vmem>> -> memref<10x18x4xf32, #tpu.memory_space<vmem>>
    %c0_13 = arith.constant 0 : index
    %c1 = arith.constant 1 : index
    %c0_14 = arith.constant 0 : index
    %8 = vector.load %7[%c0_13, %c1, %c0_14] : memref<10x18x4xf32, #tpu.memory_space<vmem>>, vector<10x16x4xf32>
    %9 = vector.extract_strided_slice %5 {offsets = [0, 0, 0], sizes = [8, 16, 4], strides = [1, 1, 1]} : vector<10x16x4xf32> to vector<8x16x4xf32>
    %10 = vector.extract_strided_slice %8 {offsets = [0, 0, 0], sizes = [8, 16, 4], strides = [1, 1, 1]} : vector<10x16x4xf32> to vector<8x16x4xf32>
    %11 = vector.extract_strided_slice %5 {offsets = [1, 0, 0], sizes = [8, 16, 4], strides = [1, 1, 1]} : vector<10x16x4xf32> to vector<8x16x4xf32>
    %12 = vector.extract_strided_slice %8 {offsets = [1, 0, 0], sizes = [8, 16, 4], strides = [1, 1, 1]} : vector<10x16x4xf32> to vector<8x16x4xf32>
    %13 = vector.shape_cast %9 : vector<8x16x4xf32> to vector<128x4xf32>
    %c0_15 = arith.constant 0 : index
    %c0_16 = arith.constant 0 : index
    %c0_17 = arith.constant 0 : index
    %c0_18 = arith.constant 0 : index
    %14 = vector.load %arg3[%c0_15, %c0_16, %c0_17, %c0_18] : memref<4x4x4x4xf32, #tpu.memory_space<vmem>>, vector<1x1x4x4xf32>
    %15 = vector.shape_cast %14 : vector<1x1x4x4xf32> to vector<4x4xf32>
    %cst = arith.constant dense<0.000000e+00> : vector<128x4xf32>
    %16 = tpu.matmul %13, %15, %cst {dimension_numbers = #tpu.dot_dimension_numbers<[1], [0], [0], [1], [0, 0, 1, 1], [], []>} : vector<128x4xf32>, vector<4x4xf32>, vector<128x4xf32> -> vector<128x4xf32>
    %17 = arith.addf %2, %16 : vector<128x4xf32>
    %18 = vector.shape_cast %10 : vector<8x16x4xf32> to vector<128x4xf32>
    %c0_19 = arith.constant 0 : index
    %c1_20 = arith.constant 1 : index
    %c0_21 = arith.constant 0 : index
    %c0_22 = arith.constant 0 : index
    %19 = vector.load %arg3[%c0_19, %c1_20, %c0_21, %c0_22] : memref<4x4x4x4xf32, #tpu.memory_space<vmem>>, vector<1x1x4x4xf32>
    %20 = vector.shape_cast %19 : vector<1x1x4x4xf32> to vector<4x4xf32>
    %cst_23 = arith.constant dense<0.000000e+00> : vector<128x4xf32>
    %21 = tpu.matmul %18, %20, %cst_23 {dimension_numbers = #tpu.dot_dimension_numbers<[1], [0], [0], [1], [0, 0, 1, 1], [], []>} : vector<128x4xf32>, vector<4x4xf32>, vector<128x4xf32> -> vector<128x4xf32>
    %22 = arith.addf %17, %21 : vector<128x4xf32>
    %23 = vector.shape_cast %11 : vector<8x16x4xf32> to vector<128x4xf32>
    %c0_24 = arith.constant 0 : index
    %c2 = arith.constant 2 : index
    %c0_25 = arith.constant 0 : index
    %c0_26 = arith.constant 0 : index
    %24 = vector.load %arg3[%c0_24, %c2, %c0_25, %c0_26] : memref<4x4x4x4xf32, #tpu.memory_space<vmem>>, vector<1x1x4x4xf32>
    %25 = vector.shape_cast %24 : vector<1x1x4x4xf32> to vector<4x4xf32>
    %cst_27 = arith.constant dense<0.000000e+00> : vector<128x4xf32>
    %26 = tpu.matmul %23, %25, %cst_27 {dimension_numbers = #tpu.dot_dimension_numbers<[1], [0], [0], [1], [0, 0, 1, 1], [], []>} : vector<128x4xf32>, vector<4x4xf32>, vector<128x4xf32> -> vector<128x4xf32>
    %27 = arith.addf %22, %26 : vector<128x4xf32>
    %28 = vector.shape_cast %12 : vector<8x16x4xf32> to vector<128x4xf32>
    %c0_28 = arith.constant 0 : index
    %c3 = arith.constant 3 : index
    %c0_29 = arith.constant 0 : index
    %c0_30 = arith.constant 0 : index
    %29 = vector.load %arg3[%c0_28, %c3, %c0_29, %c0_30] : memref<4x4x4x4xf32, #tpu.memory_space<vmem>>, vector<1x1x4x4xf32>
    %30 = vector.shape_cast %29 : vector<1x1x4x4xf32> to vector<4x4xf32>
    %cst_31 = arith.constant dense<0.000000e+00> : vector<128x4xf32>
    %31 = tpu.matmul %28, %30, %cst_31 {dimension_numbers = #tpu.dot_dimension_numbers<[1], [0], [0], [1], [0, 0, 1, 1], [], []>} : vector<128x4xf32>, vector<4x4xf32>, vector<128x4xf32> -> vector<128x4xf32>
    %32 = arith.addf %27, %31 : vector<128x4xf32>
    %33 = vector.shape_cast %32 : vector<128x4xf32> to vector<8x16x4xf32>
    %c0_32 = arith.constant 0 : index
    %c0_33 = arith.constant 0 : index
    %c0_34 = arith.constant 0 : index
    %c0_35 = arith.constant 0 : index
    %c0_36 = arith.constant 0 : index
    %34 = vector.load %arg5[%c0_32, %c0_33, %c0_34, %c0_35, %c0_36] : memref<1x4x8x16x4xf32, #tpu.memory_space<vmem>>, vector<1x1x8x16x4xf32>
    %35 = vector.shape_cast %34 : vector<1x1x8x16x4xf32> to vector<8x16x4xf32>
    %36 = vector.shape_cast %33 : vector<8x16x4xf32> to vector<1x1x8x16x4xf32>
    tpu.vector_store %arg5[%c0_32, %c0_33, %c0_34, %c0_35, %c0_36], %36 {strides = array<i32>} : memref<1x4x8x16x4xf32, #tpu.memory_space<vmem>>, vector<1x1x8x16x4xf32>,
    %37 = vector.extract_strided_slice %5 {offsets = [1, 0, 0], sizes = [8, 16, 4], strides = [1, 1, 1]} : vector<10x16x4xf32> to vector<8x16x4xf32>
    %38 = vector.extract_strided_slice %8 {offsets = [1, 0, 0], sizes = [8, 16, 4], strides = [1, 1, 1]} : vector<10x16x4xf32> to vector<8x16x4xf32>
    %39 = vector.extract_strided_slice %5 {offsets = [2, 0, 0], sizes = [8, 16, 4], strides = [1, 1, 1]} : vector<10x16x4xf32> to vector<8x16x4xf32>
    %40 = vector.extract_strided_slice %8 {offsets = [2, 0, 0], sizes = [8, 16, 4], strides = [1, 1, 1]} : vector<10x16x4xf32> to vector<8x16x4xf32>
    %41 = vector.shape_cast %37 : vector<8x16x4xf32> to vector<128x4xf32>
    %c2_37 = arith.constant 2 : index
    %c0_38 = arith.constant 0 : index
    %c0_39 = arith.constant 0 : index
    %c0_40 = arith.constant 0 : index
    %42 = vector.load %arg3[%c2_37, %c0_38, %c0_39, %c0_40] : memref<4x4x4x4xf32, #tpu.memory_space<vmem>>, vector<1x1x4x4xf32>
    %43 = vector.shape_cast %42 : vector<1x1x4x4xf32> to vector<4x4xf32>
    %cst_41 = arith.constant dense<0.000000e+00> : vector<128x4xf32>
    %44 = tpu.matmul %41, %43, %cst_41 {dimension_numbers = #tpu.dot_dimension_numbers<[1], [0], [0], [1], [0, 0, 1, 1], [], []>} : vector<128x4xf32>, vector<4x4xf32>, vector<128x4xf32> -> vector<128x4xf32>
    %45 = arith.addf %2, %44 : vector<128x4xf32>
    %46 = vector.shape_cast %38 : vector<8x16x4xf32> to vector<128x4xf32>
    %c2_42 = arith.constant 2 : index
    %c1_43 = arith.constant 1 : index
    %c0_44 = arith.constant 0 : index
    %c0_45 = arith.constant 0 : index
    %47 = vector.load %arg3[%c2_42, %c1_43, %c0_44, %c0_45] : memref<4x4x4x4xf32, #tpu.memory_space<vmem>>, vector<1x1x4x4xf32>
    %48 = vector.shape_cast %47 : vector<1x1x4x4xf32> to vector<4x4xf32>
    %cst_46 = arith.constant dense<0.000000e+00> : vector<128x4xf32>
    %49 = tpu.matmul %46, %48, %cst_46 {dimension_numbers = #tpu.dot_dimension_numbers<[1], [0], [0], [1], [0, 0, 1, 1], [], []>} : vector<128x4xf32>, vector<4x4xf32>, vector<128x4xf32> -> vector<128x4xf32>
    %50 = arith.addf %45, %49 : vector<128x4xf32>
    %51 = vector.shape_cast %39 : vector<8x16x4xf32> to vector<128x4xf32>
    %c2_47 = arith.constant 2 : index
    %c2_48 = arith.constant 2 : index
    %c0_49 = arith.constant 0 : index
    %c0_50 = arith.constant 0 : index
    %52 = vector.load %arg3[%c2_47, %c2_48, %c0_49, %c0_50] : memref<4x4x4x4xf32, #tpu.memory_space<vmem>>, vector<1x1x4x4xf32>
    %53 = vector.shape_cast %52 : vector<1x1x4x4xf32> to vector<4x4xf32>
    %cst_51 = arith.constant dense<0.000000e+00> : vector<128x4xf32>
    %54 = tpu.matmul %51, %53, %cst_51 {dimension_numbers = #tpu.dot_dimension_numbers<[1], [0], [0], [1], [0, 0, 1, 1], [], []>} : vector<128x4xf32>, vector<4x4xf32>, vector<128x4xf32> -> vector<128x4xf32>
    %55 = arith.addf %50, %54 : vector<128x4xf32>
    %56 = vector.shape_cast %40 : vector<8x16x4xf32> to vector<128x4xf32>
    %c2_52 = arith.constant 2 : index
    %c3_53 = arith.constant 3 : index
    %c0_54 = arith.constant 0 : index
    %c0_55 = arith.constant 0 : index
    %57 = vector.load %arg3[%c2_52, %c3_53, %c0_54, %c0_55] : memref<4x4x4x4xf32, #tpu.memory_space<vmem>>, vector<1x1x4x4xf32>
    %58 = vector.shape_cast %57 : vector<1x1x4x4xf32> to vector<4x4xf32>
    %cst_56 = arith.constant dense<0.000000e+00> : vector<128x4xf32>
    %59 = tpu.matmul %56, %58, %cst_56 {dimension_numbers = #tpu.dot_dimension_numbers<[1], [0], [0], [1], [0, 0, 1, 1], [], []>} : vector<128x4xf32>, vector<4x4xf32>, vector<128x4xf32> -> vector<128x4xf32>
    %60 = arith.addf %55, %59 : vector<128x4xf32>
    %61 = vector.shape_cast %60 : vector<128x4xf32> to vector<8x16x4xf32>
    %c0_57 = arith.constant 0 : index
    %c2_58 = arith.constant 2 : index
    %c0_59 = arith.constant 0 : index
    %c0_60 = arith.constant 0 : index
    %c0_61 = arith.constant 0 : index
    %62 = vector.load %arg5[%c0_57, %c2_58, %c0_59, %c0_60, %c0_61] : memref<1x4x8x16x4xf32, #tpu.memory_space<vmem>>, vector<1x1x8x16x4xf32>
    %63 = vector.shape_cast %62 : vector<1x1x8x16x4xf32> to vector<8x16x4xf32>
    %64 = vector.shape_cast %61 : vector<8x16x4xf32> to vector<1x1x8x16x4xf32>
    tpu.vector_store %arg5[%c0_57, %c2_58, %c0_59, %c0_60, %c0_61], %64 {strides = array<i32>} : memref<1x4x8x16x4xf32, #tpu.memory_space<vmem>>, vector<1x1x8x16x4xf32>,
    %c0_i32_62 = arith.constant 0 : i32
    %c0_i32_63 = arith.constant 0 : i32
    %c0_i32_64 = arith.constant 0 : i32
    %c0_i32_65 = arith.constant 0 : i32
    %c0_i32_66 = arith.constant 0 : i32
    %65 = tpu.memref_slice %arg2[%c0_i32_62, %c0_i32_63, %c0_i32_64, %c0_i32_65, %c0_i32_66] : memref<1x1x10x18x4xf32, #tpu.memory_space<vmem>> -> memref<1x1x10x18x4xf32, #tpu.memory_space<vmem>>
    %66 = tpu.memref_squeeze %65 : memref<1x1x10x18x4xf32, #tpu.memory_space<vmem>> -> memref<10x18x4xf32, #tpu.memory_space<vmem>>
    %c0_67 = arith.constant 0 : index
    %c1_68 = arith.constant 1 : index
    %c0_69 = arith.constant 0 : index
    %67 = vector.load %66[%c0_67, %c1_68, %c0_69] : memref<10x18x4xf32, #tpu.memory_space<vmem>>, vector<10x16x4xf32>
    %c0_i32_70 = arith.constant 0 : i32
    %c0_i32_71 = arith.constant 0 : i32
    %c0_i32_72 = arith.constant 0 : i32
    %c0_i32_73 = arith.constant 0 : i32
    %c0_i32_74 = arith.constant 0 : i32
    %68 = tpu.memref_slice %arg2[%c0_i32_70, %c0_i32_71, %c0_i32_72, %c0_i32_73, %c0_i32_74] : memref<1x1x10x18x4xf32, #tpu.memory_space<vmem>> -> memref<1x1x10x18x4xf32, #tpu.memory_space<vmem>>
    %69 = tpu.memref_squeeze %68 : memref<1x1x10x18x4xf32, #tpu.memory_space<vmem>> -> memref<10x18x4xf32, #tpu.memory_space<vmem>>
    %c0_75 = arith.constant 0 : index
    %c2_76 = arith.constant 2 : index
    %c0_77 = arith.constant 0 : index
    %70 = vector.load %69[%c0_75, %c2_76, %c0_77] : memref<10x18x4xf32, #tpu.memory_space<vmem>>, vector<10x16x4xf32>
    %71 = vector.extract_strided_slice %67 {offsets = [0, 0, 0], sizes = [8, 16, 4], strides = [1, 1, 1]} : vector<10x16x4xf32> to vector<8x16x4xf32>
    %72 = vector.extract_strided_slice %70 {offsets = [0, 0, 0], sizes = [8, 16, 4], strides = [1, 1, 1]} : vector<10x16x4xf32> to vector<8x16x4xf32>
    %73 = vector.extract_strided_slice %67 {offsets = [1, 0, 0], sizes = [8, 16, 4], strides = [1, 1, 1]} : vector<10x16x4xf32> to vector<8x16x4xf32>
    %74 = vector.extract_strided_slice %70 {offsets = [1, 0, 0], sizes = [8, 16, 4], strides = [1, 1, 1]} : vector<10x16x4xf32> to vector<8x16x4xf32>
    %75 = vector.shape_cast %71 : vector<8x16x4xf32> to vector<128x4xf32>
    %c1_78 = arith.constant 1 : index
    %c0_79 = arith.constant 0 : index
    %c0_80 = arith.constant 0 : index
    %c0_81 = arith.constant 0 : index
    %76 = vector.load %arg3[%c1_78, %c0_79, %c0_80, %c0_81] : memref<4x4x4x4xf32, #tpu.memory_space<vmem>>, vector<1x1x4x4xf32>
    %77 = vector.shape_cast %76 : vector<1x1x4x4xf32> to vector<4x4xf32>
    %cst_82 = arith.constant dense<0.000000e+00> : vector<128x4xf32>
    %78 = tpu.matmul %75, %77, %cst_82 {dimension_numbers = #tpu.dot_dimension_numbers<[1], [0], [0], [1], [0, 0, 1, 1], [], []>} : vector<128x4xf32>, vector<4x4xf32>, vector<128x4xf32> -> vector<128x4xf32>
    %79 = arith.addf %2, %78 : vector<128x4xf32>
    %80 = vector.shape_cast %72 : vector<8x16x4xf32> to vector<128x4xf32>
    %c1_83 = arith.constant 1 : index
    %c1_84 = arith.constant 1 : index
    %c0_85 = arith.constant 0 : index
    %c0_86 = arith.constant 0 : index
    %81 = vector.load %arg3[%c1_83, %c1_84, %c0_85, %c0_86] : memref<4x4x4x4xf32, #tpu.memory_space<vmem>>, vector<1x1x4x4xf32>
    %82 = vector.shape_cast %81 : vector<1x1x4x4xf32> to vector<4x4xf32>
    %cst_87 = arith.constant dense<0.000000e+00> : vector<128x4xf32>
    %83 = tpu.matmul %80, %82, %cst_87 {dimension_numbers = #tpu.dot_dimension_numbers<[1], [0], [0], [1], [0, 0, 1, 1], [], []>} : vector<128x4xf32>, vector<4x4xf32>, vector<128x4xf32> -> vector<128x4xf32>
    %84 = arith.addf %79, %83 : vector<128x4xf32>
    %85 = vector.shape_cast %73 : vector<8x16x4xf32> to vector<128x4xf32>
    %c1_88 = arith.constant 1 : index
    %c2_89 = arith.constant 2 : index
    %c0_90 = arith.constant 0 : index
    %c0_91 = arith.constant 0 : index
    %86 = vector.load %arg3[%c1_88, %c2_89, %c0_90, %c0_91] : memref<4x4x4x4xf32, #tpu.memory_space<vmem>>, vector<1x1x4x4xf32>
    %87 = vector.shape_cast %86 : vector<1x1x4x4xf32> to vector<4x4xf32>
    %cst_92 = arith.constant dense<0.000000e+00> : vector<128x4xf32>
    %88 = tpu.matmul %85, %87, %cst_92 {dimension_numbers = #tpu.dot_dimension_numbers<[1], [0], [0], [1], [0, 0, 1, 1], [], []>} : vector<128x4xf32>, vector<4x4xf32>, vector<128x4xf32> -> vector<128x4xf32>
    %89 = arith.addf %84, %88 : vector<128x4xf32>
    %90 = vector.shape_cast %74 : vector<8x16x4xf32> to vector<128x4xf32>
    %c1_93 = arith.constant 1 : index
    %c3_94 = arith.constant 3 : index
    %c0_95 = arith.constant 0 : index
    %c0_96 = arith.constant 0 : index
    %91 = vector.load %arg3[%c1_93, %c3_94, %c0_95, %c0_96] : memref<4x4x4x4xf32, #tpu.memory_space<vmem>>, vector<1x1x4x4xf32>
    %92 = vector.shape_cast %91 : vector<1x1x4x4xf32> to vector<4x4xf32>
    %cst_97 = arith.constant dense<0.000000e+00> : vector<128x4xf32>
    %93 = tpu.matmul %90, %92, %cst_97 {dimension_numbers = #tpu.dot_dimension_numbers<[1], [0], [0], [1], [0, 0, 1, 1], [], []>} : vector<128x4xf32>, vector<4x4xf32>, vector<128x4xf32> -> vector<128x4xf32>
    %94 = arith.addf %89, %93 : vector<128x4xf32>
    %95 = vector.shape_cast %94 : vector<128x4xf32> to vector<8x16x4xf32>
    %c0_98 = arith.constant 0 : index
    %c1_99 = arith.constant 1 : index
    %c0_100 = arith.constant 0 : index
    %c0_101 = arith.constant 0 : index
    %c0_102 = arith.constant 0 : index
    %96 = vector.load %arg5[%c0_98, %c1_99, %c0_100, %c0_101, %c0_102] : memref<1x4x8x16x4xf32, #tpu.memory_space<vmem>>, vector<1x1x8x16x4xf32>
    %97 = vector.shape_cast %96 : vector<1x1x8x16x4xf32> to vector<8x16x4xf32>
    %98 = vector.shape_cast %95 : vector<8x16x4xf32> to vector<1x1x8x16x4xf32>
    tpu.vector_store %arg5[%c0_98, %c1_99, %c0_100, %c0_101, %c0_102], %98 {strides = array<i32>} : memref<1x4x8x16x4xf32, #tpu.memory_space<vmem>>, vector<1x1x8x16x4xf32>,
    %99 = vector.extract_strided_slice %67 {offsets = [1, 0, 0], sizes = [8, 16, 4], strides = [1, 1, 1]} : vector<10x16x4xf32> to vector<8x16x4xf32>
    %100 = vector.extract_strided_slice %70 {offsets = [1, 0, 0], sizes = [8, 16, 4], strides = [1, 1, 1]} : vector<10x16x4xf32> to vector<8x16x4xf32>
    %101 = vector.extract_strided_slice %67 {offsets = [2, 0, 0], sizes = [8, 16, 4], strides = [1, 1, 1]} : vector<10x16x4xf32> to vector<8x16x4xf32>
    %102 = vector.extract_strided_slice %70 {offsets = [2, 0, 0], sizes = [8, 16, 4], strides = [1, 1, 1]} : vector<10x16x4xf32> to vector<8x16x4xf32>
    %103 = vector.shape_cast %99 : vector<8x16x4xf32> to vector<128x4xf32>
    %c3_103 = arith.constant 3 : index
    %c0_104 = arith.constant 0 : index
    %c0_105 = arith.constant 0 : index
    %c0_106 = arith.constant 0 : index
    %104 = vector.load %arg3[%c3_103, %c0_104, %c0_105, %c0_106] : memref<4x4x4x4xf32, #tpu.memory_space<vmem>>, vector<1x1x4x4xf32>
    %105 = vector.shape_cast %104 : vector<1x1x4x4xf32> to vector<4x4xf32>
    %cst_107 = arith.constant dense<0.000000e+00> : vector<128x4xf32>
    %106 = tpu.matmul %103, %105, %cst_107 {dimension_numbers = #tpu.dot_dimension_numbers<[1], [0], [0], [1], [0, 0, 1, 1], [], []>} : vector<128x4xf32>, vector<4x4xf32>, vector<128x4xf32> -> vector<128x4xf32>
    %107 = arith.addf %2, %106 : vector<128x4xf32>
    %108 = vector.shape_cast %100 : vector<8x16x4xf32> to vector<128x4xf32>
    %c3_108 = arith.constant 3 : index
    %c1_109 = arith.constant 1 : index
    %c0_110 = arith.constant 0 : index
    %c0_111 = arith.constant 0 : index
    %109 = vector.load %arg3[%c3_108, %c1_109, %c0_110, %c0_111] : memref<4x4x4x4xf32, #tpu.memory_space<vmem>>, vector<1x1x4x4xf32>
    %110 = vector.shape_cast %109 : vector<1x1x4x4xf32> to vector<4x4xf32>
    %cst_112 = arith.constant dense<0.000000e+00> : vector<128x4xf32>
    %111 = tpu.matmul %108, %110, %cst_112 {dimension_numbers = #tpu.dot_dimension_numbers<[1], [0], [0], [1], [0, 0, 1, 1], [], []>} : vector<128x4xf32>, vector<4x4xf32>, vector<128x4xf32> -> vector<128x4xf32>
    %112 = arith.addf %107, %111 : vector<128x4xf32>
    %113 = vector.shape_cast %101 : vector<8x16x4xf32> to vector<128x4xf32>
    %c3_113 = arith.constant 3 : index
    %c2_114 = arith.constant 2 : index
    %c0_115 = arith.constant 0 : index
    %c0_116 = arith.constant 0 : index
    %114 = vector.load %arg3[%c3_113, %c2_114, %c0_115, %c0_116] : memref<4x4x4x4xf32, #tpu.memory_space<vmem>>, vector<1x1x4x4xf32>
    %115 = vector.shape_cast %114 : vector<1x1x4x4xf32> to vector<4x4xf32>
    %cst_117 = arith.constant dense<0.000000e+00> : vector<128x4xf32>
    %116 = tpu.matmul %113, %115, %cst_117 {dimension_numbers = #tpu.dot_dimension_numbers<[1], [0], [0], [1], [0, 0, 1, 1], [], []>} : vector<128x4xf32>, vector<4x4xf32>, vector<128x4xf32> -> vector<128x4xf32>
    %117 = arith.addf %112, %116 : vector<128x4xf32>
    %118 = vector.shape_cast %102 : vector<8x16x4xf32> to vector<128x4xf32>
    %c3_118 = arith.constant 3 : index
    %c3_119 = arith.constant 3 : index
    %c0_120 = arith.constant 0 : index
    %c0_121 = arith.constant 0 : index
    %119 = vector.load %arg3[%c3_118, %c3_119, %c0_120, %c0_121] : memref<4x4x4x4xf32, #tpu.memory_space<vmem>>, vector<1x1x4x4xf32>
    %120 = vector.shape_cast %119 : vector<1x1x4x4xf32> to vector<4x4xf32>
    %cst_122 = arith.constant dense<0.000000e+00> : vector<128x4xf32>
    %121 = tpu.matmul %118, %120, %cst_122 {dimension_numbers = #tpu.dot_dimension_numbers<[1], [0], [0], [1], [0, 0, 1, 1], [], []>} : vector<128x4xf32>, vector<4x4xf32>, vector<128x4xf32> -> vector<128x4xf32>
    %122 = arith.addf %117, %121 : vector<128x4xf32>
    %123 = vector.shape_cast %122 : vector<128x4xf32> to vector<8x16x4xf32>
    %c0_123 = arith.constant 0 : index
    %c3_124 = arith.constant 3 : index
    %c0_125 = arith.constant 0 : index
    %c0_126 = arith.constant 0 : index
    %c0_127 = arith.constant 0 : index
    %124 = vector.load %arg5[%c0_123, %c3_124, %c0_125, %c0_126, %c0_127] : memref<1x4x8x16x4xf32, #tpu.memory_space<vmem>>, vector<1x1x8x16x4xf32>
    %125 = vector.shape_cast %124 : vector<1x1x8x16x4xf32> to vector<8x16x4xf32>
    %126 = vector.shape_cast %123 : vector<8x16x4xf32> to vector<1x1x8x16x4xf32>
    tpu.vector_store %arg5[%c0_123, %c3_124, %c0_125, %c0_126, %c0_127], %126 {strides = array<i32>} : memref<1x4x8x16x4xf32, #tpu.memory_space<vmem>>, vector<1x1x8x16x4xf32>,
    return
  }
  func.func @transform_0(%arg0: i32, %arg1: i32) -> (i32, i32, i32, i32, i32) {
    %c0_i32 = arith.constant 0 : i32
    %c0_i32_0 = arith.constant 0 : i32
    %c0_i32_1 = arith.constant 0 : i32
    %c0_i32_2 = arith.constant 0 : i32
    return %arg0, %arg1, %c0_i32, %c0_i32_0, %c0_i32_1 : i32, i32, i32, i32, i32
  }
  func.func @transform_1(%arg0: i32, %arg1: i32) -> (i32, i32, i32, i32) {
    %c0_i32 = arith.constant 0 : i32
    %c0_i32_0 = arith.constant 0 : i32
    %c0_i32_1 = arith.constant 0 : i32
    %c0_i32_2 = arith.constant 0 : i32
    %c0_i32_3 = arith.constant 0 : i32
    return %c0_i32, %c0_i32_0, %c0_i32_1, %c0_i32_2 : i32, i32, i32, i32
  }
  func.func @transform_2(%arg0: i32, %arg1: i32) -> (i32, i32) {
    %c0_i32 = arith.constant 0 : i32
    %c0_i32_0 = arith.constant 0 : i32
    %c0_i32_1 = arith.constant 0 : i32
    return %c0_i32, %c0_i32_0 : i32, i32
  }
  func.func @transform_3(%arg0: i32, %arg1: i32) -> (i32, i32, i32, i32, i32) {
    %c0_i32 = arith.constant 0 : i32
    %c0_i32_0 = arith.constant 0 : i32
    %c0_i32_1 = arith.constant 0 : i32
    %c0_i32_2 = arith.constant 0 : i32
    return %arg0, %c0_i32, %arg1, %c0_i32_0, %c0_i32_1 : i32, i32, i32, i32, i32
  }
}

</mosaic_0001>

<bundles_post_ra>
// kernel: _lambda_.1
= control target key start
LH: loop header
LB: loop body
LE: loop exit
PB: predicated region body
PF: predicated region fallthrough
CT: control target
= control target key end

     0   :  { %s5045_s12 = smov 0   ;;  %s5047_s13 = smov 0   ;;  %s6219_s0 = inlined_call_operand.vmem [shape: f32[2,2,10,18,4], index: 0, kind: input, shape index: {}]   ;;  %s6220_s1 = inlined_call_operand.vmem [shape: f32[4,4,4,4], index: 1, kind: input, shape index: {}]   ;;  %s6221_s2 = inlined_call_operand.vmem [shape: f32[1,4], index: 2, kind: input, shape index: {}]   ;;  %s6222_s3 = inlined_call_operand.vmem [shape: f32[2,4,16,16,4], index: 3, kind: output, shape index: {}]  }
   0x1   :  { %s5049_s14 = smov 0   ;;  %s5051_s15 = smov 0  }
   0x2   :  { %s5053_s16 = smov 0   ;;  %s5055_s17 = smov 0  }
   0x3   :  { %s5057_s18 = smov 0  }
   0x4 LB: > { %s22_s19 = sadd.s32 1, %s5015_s16  ;;  %s25_s20 = sadd.s32 1, %s5019_s17  ;;  %s5023_s18 = sphi %s5057_s18, %s13_s18   ;;  %s5019_s17 = sphi %s5055_s17, %s6229_s17   ;;  %s5015_s16 = sphi %s5053_s16, %s6228_s16   ;;  %s5011_s15 = sphi %s5051_s15, %s6227_s15   ;;  %s5007_s14 = sphi %s5049_s14, %s6226_s14   ;;  %s5003_s13 = sphi %s5047_s13, %s6225_s13   ;;  %s4999_s12 = sphi %s5045_s12, %s6224_s12  }
   0x5   : > { %p23_p0 = scmp.ge.s32.totalorder %s22_s19, 2  ;;  %s3616_s21 = sadd.s32 4294967295, %s5023_s18  }
   0x6   : > { %p114_p1 = scmp.ne.s32.totalorder %s5003_s13, %s4999_s12  ;;  %p115_p2 = scmp.eq.s32.totalorder %s3616_s21, 3 }
   0x7   : > { %s6231_s19 = smov (%p23_p0, %s22_s19), 0  ;;  %s6233_s20 = smov (!%p23_p0, %s25_s20), %s5019_s17 }
   0x8   : > { %s100_s22 = ssub.s32 %s5015_s16, %s6231_s19  ;;  %p27_p3 = scmp.ge.s32.totalorder %s6233_s20, 2 }
   0x9   : > { %p3620_p4 = scmp.ge.s32.totalorder %s5023_s18, 1  ;;  %p5091_p5 = por %p115_p2, %p114_p1 }
   0xa   : > { %p157_p6 = scmp.lt.s32.totalorder %s5023_s18, 5  ;;  %s6235_s20 = smov (%p27_p3, %s6233_s20), 0 }
   0xb   : > { %s99_s24 = ssub.s32 %s5019_s17, %s6235_s20  ;;  %s104_s26 = sadd.s32 1, %s5003_s13 }
   0xc   : > { %p158_p7 = pnand %p3620_p4, %p157_p6  ;;  %s101_s25 = sor.u32 %s100_s22, %s99_s24 }
   0xd   : > { %p102_p8 = scmp.eq.s32.totalorder %s101_s25, 0  ;;  %v241_v0 = vld [vmem:[%s6220_s1] sm:$0xf] (!%p158_p7)  ;;  %vm291_vm0 = vcmask (!%p158_p7), 1043456   ;;  %p184_p9 = scmp.lt.s32.totalorder (!%p158_p7), %s5011_s15, 1  ;;  %vm242_vm1 = vcmask (!%p158_p7), 31744  }
   0xe   : > { %161 = sbr.rel (%p158_p7) target bundleno = 517 (0x205), region = 32  ;;  %v3695_v1 = vld [vmem:[%s6220_s1 + $0x20] sm:$0xf] (!%p158_p7)  ;;  %4239 = vmatprep.subr.msk.mxu0 (!%p158_p7), %vm291_vm0, %v241_v0  ;;  %p186_p10 = scmp.lt.s32.totalorder (!%p158_p7), %s5007_s14, 1  ;;  %v3641_v2 = vld [vmem:[%s6220_s1 + $0x4] sm:$0xf] (!%p158_p7) }
   0xf   : > { %s5102_s27 = scalar_select %p102_p8, %s5003_s13, %s104_s26  }
  0x10   : > { %4343 = vmatprep.subr.msk.mxu1 (!%p158_p7), %vm291_vm0, %v3695_v1  ;;  %v3713_v3 = vld [vmem:[%s6220_s1 + $0x24] sm:$0xf] (!%p158_p7)  ;;  %4240 = vmatpush3.msk.msra.mxu0 (!%p158_p7), %vm291_vm0, %v241_v0  ;;  %v3659_v9 = vld [vmem:[%s6220_s1 + $0x8] sm:$0xf] (!%p158_p7)  ;;  %v3677_v29 = vld [vmem:[%s6220_s1 + $0xc] sm:$0xf] (!%p158_p7) }
  0x11   : > { %4344 = vmatpush3.msk.msra.mxu1 (!%p158_p7), %vm291_vm0, %v3695_v1  ;;  %4265 = vmatprep.subr.msk.mxu0 (!%p158_p7), %vm291_vm0, %v3641_v2  ;;  %v3731_v10 = vld [vmem:[%s6220_s1 + $0x28] sm:$0xf] (!%p158_p7)  ;;  %v3749_v30 = vld [vmem:[%s6220_s1 + $0x2c] sm:$0xf] (!%p158_p7)  ;;  %v3783_v44 = vld [vmem:[%s6220_s1 + $0x10] sm:$0xf] (!%p158_p7) }
  0x12   : > { %4369 = vmatprep.subr.msk.mxu1 (!%p158_p7), %vm291_vm0, %v3713_v3  ;;  %v3871_v45 = vld [vmem:[%s6220_s1 + $0x30] sm:$0xf] (!%p158_p7)  ;;  %v3801_v48 = vld [vmem:[%s6220_s1 + $0x14] sm:$0xf] (!%p158_p7)  ;;  %v3819_v52 = vld [vmem:[%s6220_s1 + $0x18] sm:$0xf] (!%p158_p7) }
  0x13   : > { %v3889_v49 = vld [vmem:[%s6220_s1 + $0x34] sm:$0xf] (!%p158_p7)  ;;  %v3907_v53 = vld [vmem:[%s6220_s1 + $0x38] sm:$0xf] (!%p158_p7)  ;;  %v3837_v59 = vld [vmem:[%s6220_s1 + $0x1c] sm:$0xf] (!%p158_p7) }
  0x14   : > { %v3925_v60 = vld [vmem:[%s6220_s1 + $0x3c] sm:$0xf] (!%p158_p7) }
  0x15   : > { %s185_s9 = scalar_select %p184_p9, %s5011_s15, 1 }
  0x16   : > { %s187_s10 = scalar_select %p186_p10, %s5007_s14, 1 }
  0x17   : > { %s4912_s11 = smul.u32 60, %s185_s9  ;;  %s3962_s25 = sshll.u32 (%p5091_p5), %s5011_s15, 7 }
  0x18   : > { %s4911_s21 = smul.u32 30, %s187_s10 }
  0x1a   : > { %s190_s22 = sadd.s32 %s4912_s11, %s4911_s21  ;;  %s181_s11 = sand.u32 1, %s4999_s12  }
  0x1b   : > { %s3622_s24 = sshll.u32 %s190_s22, 3  ;;  %s3621_s21 = sshll.u32 %s181_s11, 9 }
  0x1c   : > { %s5129_s28 = scalar_lea.vmem %s6219_s0, %s3622_s24  ;;  %s3966_s12 = sshll.u32 (%p5091_p5), %s5007_s14, 4 }
  0x1d   : > { %v201_v4 = vld [vmem:[%s5129_s28] sm:$0xff]  ;;  %v5133_v5 = vld [vmem:[%s5129_s28 + $0x18] sm:$0xff]  ;;  %v202_v6 = vld [vmem:[%s5129_s28 + $0x8] sm:$0xff]  ;;  %s3255_s23 = sadd.s32 (%p5091_p5), %s3966_s12, %s3962_s25 }
  0x1e   : > { %4241 = vmatprep.mubr.msk.f32.mxu0 %vm242_vm1, %v201_v4  ;;  %4345 = vmatprep.mubr.msk.f32.mxu1 %vm242_vm1, %v5133_v5  ;;  %v5140_v7 = vld [vmem:[%s5129_s28 + $0x20] sm:$0xff]  ;;  %v5143_v8 = vld [vmem:[%s5129_s28 + $0x30] sm:$0xff]  ;;  %v5157_v11 = vld [vmem:[%s5129_s28 + $0x38] sm:$0xff]  ;;  %s3963_s26 = sshll.u32 (%p5091_p5), %s3255_s23, 3 }
  0x1f   : > { %4242 = vmatmul.mubr.msk.f32.vlgmr.msra.gmra.mrb[0].mxu0 %vm242_vm1, %v202_v6  ;;  %4346 = vmatmul.mubr.msk.f32.vlgmr.msra.gmra.mrb[0].mxu1 %vm242_vm1, %v5140_v7  ;;  %v5164_v12 = vld [vmem:[%s5129_s28 + $0x48] sm:$0xff]  ;;  %v5177_v13 = vld [vmem:[%s5129_s28 + $0x50] sm:$0xff]  ;;  %v5180_v14 = vld [vmem:[%s5129_s28 + $0x60] sm:$0xff]  ;;  %s6077_s4 = scalar_lea.vmem (%p5091_p5), %s6222_s3, %s3963_s26 }
  0x20   : > { %4266 = vmatpush3.msk.msra.mxu0 %vm291_vm0, %v3641_v2  ;;  %4370 = vmatpush3.msk.msra.mxu1 %vm291_vm0, %v3713_v3  ;;  %v5191_v15 = vld [vmem:[%s5129_s28 + $0x68] sm:$0xff]  ;;  %v5194_v16 = vld [vmem:[%s5129_s28 + $0x78] sm:$0xff]  ;;  %v5205_v17 = vld [vmem:[%s5129_s28 + $0x80] sm:$0xff] }
  0x21   : > { %4244 = vmatprep.mubr.msk.f32.mxu0 %vm242_vm1, %v5133_v5  ;;  %4348 = vmatprep.mubr.msk.f32.mxu1 %vm242_vm1, %v5143_v8  ;;  %v5208_v18 = vld [vmem:[%s5129_s28 + $0x90] sm:$0xff]  ;;  %v5219_v19 = vld [vmem:[%s5129_s28 + $0x98] sm:$0xff]  ;;  %v5222_v20 = vld [vmem:[%s5129_s28 + $0xa8] sm:$0xff] }
  0x22   : > { %4291 = vmatprep.subr.msk.mxu0 %vm291_vm0, %v3659_v9  ;;  %4395 = vmatprep.subr.msk.mxu1 %vm291_vm0, %v3731_v10  ;;  %v5233_v21 = vld [vmem:[%s5129_s28 + $0xb0] sm:$0xff]  ;;  %v5236_v22 = vld [vmem:[%s5129_s28 + $0xc0] sm:$0xff]  ;;  %v5247_v23 = vld [vmem:[%s5129_s28 + $0xc8] sm:$0xff] }
  0x23   : > { %4245 = vmatmul.mubr.msk.f32.gmra.mrb[2].mxu0 %vm242_vm1, %v5140_v7  ;;  %4349 = vmatmul.mubr.msk.f32.gmra.mrb[2].mxu1 %vm242_vm1, %v5157_v11  ;;  %v5250_v24 = vld [vmem:[%s5129_s28 + $0x1] sm:$0xff]  ;;  %v5253_v25 = vld [vmem:[%s5129_s28 + $0x19] sm:$0xff]  ;;  %v5264_v26 = vld [vmem:[%s5129_s28 + $0x9] sm:$0xff] }
  0x24   : > { %4247 = vmatprep.mubr.msk.f32.mxu0 %vm242_vm1, %v5143_v8  ;;  %4351 = vmatprep.mubr.msk.f32.mxu1 %vm242_vm1, %v5164_v12  ;;  %v5267_v27 = vld [vmem:[%s5129_s28 + $0x21] sm:$0xff]  ;;  %v5270_v28 = vld [vmem:[%s5129_s28 + $0x31] sm:$0xff]  ;;  %v5285_v31 = vld [vmem:[%s5129_s28 + $0x39] sm:$0xff] }
  0x25   : > { %v5292_v32 = vld [vmem:[%s5129_s28 + $0x49] sm:$0xff]  ;;  %v5305_v33 = vld [vmem:[%s5129_s28 + $0x51] sm:$0xff]  ;;  %v5308_v34 = vld [vmem:[%s5129_s28 + $0x61] sm:$0xff] }
  0x26   : > { %v5319_v35 = vld [vmem:[%s5129_s28 + $0x69] sm:$0xff]  ;;  %v5322_v36 = vld [vmem:[%s5129_s28 + $0x79] sm:$0xff]  ;;  %v5333_v37 = vld [vmem:[%s5129_s28 + $0x81] sm:$0xff] }
  0x27   : > { %4248 = vmatmul.mubr.msk.f32.gmra.mrb[4].mxu0 %vm242_vm1, %v5157_v11  ;;  %4352 = vmatmul.mubr.msk.f32.gmra.mrb[4].mxu1 %vm242_vm1, %v5177_v13  ;;  %v5336_v38 = vld [vmem:[%s5129_s28 + $0x91] sm:$0xff]  ;;  %v5347_v39 = vld [vmem:[%s5129_s28 + $0x99] sm:$0xff]  ;;  %v5350_v40 = vld [vmem:[%s5129_s28 + $0xa9] sm:$0xff] }
  0x28   : > { %4250 = vmatprep.mubr.msk.f32.mxu0 %vm242_vm1, %v5164_v12  ;;  %4354 = vmatprep.mubr.msk.f32.mxu1 %vm242_vm1, %v5180_v14  ;;  %v5361_v41 = vld [vmem:[%s5129_s28 + $0xb1] sm:$0xff]  ;;  %v5364_v42 = vld [vmem:[%s5129_s28 + $0xc1] sm:$0xff]  ;;  %v5375_v43 = vld [vmem:[%s5129_s28 + $0xc9] sm:$0xff] }
  0x29   : > { %v219_v46 = vld [vmem:[%s5129_s28 + $0xd8] sm:$0xff]  ;;  %v220_v47 = vld [vmem:[%s5129_s28 + $0xe0] sm:$0xff]  ;;  %v1744_v56 = vld [vmem:[%s5129_s28 + $0xa] sm:$0xff] }
  0x2a   : > { %v5518_v50 = vld [vmem:[%s5129_s28 + $0xd9] sm:$0xff]  ;;  %v5529_v51 = vld [vmem:[%s5129_s28 + $0xe1] sm:$0xff]  ;;  %v5642_v62 = vld [vmem:[%s5129_s28 + $0x4a] sm:$0xff] }
  0x2b   : > { %4251 = vmatmul.mubr.msk.f32.gmra.mrb[6].mxu0 %vm242_vm1, %v5177_v13  ;;  %4355 = vmatmul.mubr.msk.f32.gmra.mrb[6].mxu1 %vm242_vm1, %v5191_v15  ;;  %v1743_v54 = vld [vmem:[%s5129_s28 + $0x2] sm:$0xff]  ;;  %v5607_v55 = vld [vmem:[%s5129_s28 + $0x1a] sm:$0xff]  ;;  %v5621_v58 = vld [vmem:[%s5129_s28 + $0x32] sm:$0xff] }
  0x2c   : > { %4253 = vmatprep.mubr.msk.f32.mxu0 %vm242_vm1, %v5180_v14  ;;  %4357 = vmatprep.mubr.msk.f32.mxu1 %vm242_vm1, %v5194_v16  ;;  %v5618_v57 = vld [vmem:[%s5129_s28 + $0x22] sm:$0xff]  ;;  %v5635_v61 = vld [vmem:[%s5129_s28 + $0x3a] sm:$0xff]  ;;  %v5655_v63 = vld [vmem:[%s5129_s28 + $0x52] sm:$0xff] }
  0x2d   : > { %v5658_v0 = vld [vmem:[%s5129_s28 + $0x62] sm:$0xff]  ;;  %v5669_v1 = vld [vmem:[%s5129_s28 + $0x6a] sm:$0xff]  ;;  %v5672_v2 = vld [vmem:[%s5129_s28 + $0x7a] sm:$0xff] }
  0x2e   : > { %v5683_v3 = vld [vmem:[%s5129_s28 + $0x82] sm:$0xff]  ;;  %v5686_v4 = vld [vmem:[%s5129_s28 + $0x92] sm:$0xff]  ;;  %v5700_v6 = vld [vmem:[%s5129_s28 + $0xaa] sm:$0xff] }
  0x2f   : > { %4254 = vmatmul.mubr.msk.f32.gmra.mrb[8].mxu0 %vm242_vm1, %v5191_v15  ;;  %4358 = vmatmul.mubr.msk.f32.gmra.mrb[8].mxu1 %vm242_vm1, %v5205_v17 }
  0x30   : > { %4256 = vmatprep.mubr.msk.f32.mxu0 %vm242_vm1, %v5194_v16  ;;  %4360 = vmatprep.mubr.msk.f32.mxu1 %vm242_vm1, %v5208_v18 }
  0x33   : > { %4257 = vmatmul.mubr.msk.f32.gmra.mrb[10].mxu0 %vm242_vm1, %v5205_v17  ;;  %4361 = vmatmul.mubr.msk.f32.gmra.mrb[10].mxu1 %vm242_vm1, %v5219_v19 }
  0x34   : > { %4259 = vmatprep.mubr.msk.f32.mxu0 %vm242_vm1, %v5208_v18  ;;  %4363 = vmatprep.mubr.msk.f32.mxu1 %vm242_vm1, %v5222_v20 }
  0x37   : > { %4260 = vmatmul.mubr.msk.f32.gmra.mrb[12].mxu0 %vm242_vm1, %v5219_v19  ;;  %4364 = vmatmul.mubr.msk.f32.gmra.mrb[12].mxu1 %vm242_vm1, %v5233_v21 }
  0x38   : > { %4262 = vmatprep.mubr.msk.f32.mxu0 %vm242_vm1, %v5222_v20  ;;  %4366 = vmatprep.mubr.msk.f32.mxu1 %vm242_vm1, %v5236_v22 }
  0x3b   : > { %4263 = vmatmul.mubr.msk.f32.gmra.mrb[14].mxu0 %vm242_vm1, %v5233_v21  ;;  %4367 = vmatmul.mubr.msk.f32.gmra.mrb[14].mxu1 %vm242_vm1, %v5247_v23 }
  0x3c   : > { %4267 = vmatprep.mubr.msk.f32.mxu0 %vm242_vm1, %v5250_v24  ;;  %4371 = vmatprep.mubr.msk.f32.mxu1 %vm242_vm1, %v5253_v25 }
  0x3f   : > { %4268 = vmatmul.mubr.msk.f32.vlgmr.msra.gmra.mrb[0].mxu0 %vm242_vm1, %v5264_v26  ;;  %4372 = vmatmul.mubr.msk.f32.vlgmr.msra.gmra.mrb[0].mxu1 %vm242_vm1, %v5267_v27 }
  0x40   : > { %4292 = vmatpush3.msk.msra.mxu0 %vm291_vm0, %v3659_v9  ;;  %4396 = vmatpush3.msk.msra.mxu1 %vm291_vm0, %v3731_v10  ;;  %v5725_v9 = vld [vmem:[%s5129_s28 + $0xca] sm:$0xff]  ;;  %v1761_v10 = vld [vmem:[%s5129_s28 + $0xda] sm:$0xff] }
  0x41   : > { %4270 = vmatprep.mubr.msk.f32.mxu0 %vm242_vm1, %v5253_v25  ;;  %4374 = vmatprep.mubr.msk.f32.mxu1 %vm242_vm1, %v5270_v28 }
  0x42   : > { %4317 = vmatprep.subr.msk.mxu0 %vm291_vm0, %v3677_v29  ;;  %4421 = vmatprep.subr.msk.mxu1 %vm291_vm0, %v3749_v30 }
  0x43   : > { %4271 = vmatmul.mubr.msk.f32.gmra.mrb[2].mxu0 %vm242_vm1, %v5267_v27  ;;  %4375 = vmatmul.mubr.msk.f32.gmra.mrb[2].mxu1 %vm242_vm1, %v5285_v31 }
  0x44   : > { %4273 = vmatprep.mubr.msk.f32.mxu0 %vm242_vm1, %v5270_v28  ;;  %4377 = vmatprep.mubr.msk.f32.mxu1 %vm242_vm1, %v5292_v32 }
  0x47   : > { %4274 = vmatmul.mubr.msk.f32.gmra.mrb[4].mxu0 %vm242_vm1, %v5285_v31  ;;  %4378 = vmatmul.mubr.msk.f32.gmra.mrb[4].mxu1 %vm242_vm1, %v5305_v33 }
  0x48   : > { %4276 = vmatprep.mubr.msk.f32.mxu0 %vm242_vm1, %v5292_v32  ;;  %4380 = vmatprep.mubr.msk.f32.mxu1 %vm242_vm1, %v5308_v34 }
  0x4b   : > { %4277 = vmatmul.mubr.msk.f32.gmra.mrb[6].mxu0 %vm242_vm1, %v5305_v33  ;;  %4381 = vmatmul.mubr.msk.f32.gmra.mrb[6].mxu1 %vm242_vm1, %v5319_v35 }
  0x4c   : > { %4279 = vmatprep.mubr.msk.f32.mxu0 %vm242_vm1, %v5308_v34  ;;  %4383 = vmatprep.mubr.msk.f32.mxu1 %vm242_vm1, %v5322_v36 }
  0x4f   : > { %4280 = vmatmul.mubr.msk.f32.gmra.mrb[8].mxu0 %vm242_vm1, %v5319_v35  ;;  %4384 = vmatmul.mubr.msk.f32.gmra.mrb[8].mxu1 %vm242_vm1, %v5333_v37 }
  0x50   : > { %4282 = vmatprep.mubr.msk.f32.mxu0 %vm242_vm1, %v5322_v36  ;;  %4386 = vmatprep.mubr.msk.f32.mxu1 %vm242_vm1, %v5336_v38 }
  0x53   : > { %4283 = vmatmul.mubr.msk.f32.gmra.mrb[10].mxu0 %vm242_vm1, %v5333_v37  ;;  %4387 = vmatmul.mubr.msk.f32.gmra.mrb[10].mxu1 %vm242_vm1, %v5347_v39 }
  0x54   : > { %4285 = vmatprep.mubr.msk.f32.mxu0 %vm242_vm1, %v5336_v38  ;;  %4389 = vmatprep.mubr.msk.f32.mxu1 %vm242_vm1, %v5350_v40 }
  0x57   : > { %4286 = vmatmul.mubr.msk.f32.gmra.mrb[12].mxu0 %vm242_vm1, %v5347_v39  ;;  %4390 = vmatmul.mubr.msk.f32.gmra.mrb[12].mxu1 %vm242_vm1, %v5361_v41 }
  0x58   : > { %4288 = vmatprep.mubr.msk.f32.mxu0 %vm242_vm1, %v5350_v40  ;;  %4392 = vmatprep.mubr.msk.f32.mxu1 %vm242_vm1, %v5364_v42 }
  0x5b   : > { %4289 = vmatmul.mubr.msk.f32.gmra.mrb[14].mxu0 %vm242_vm1, %v5361_v41  ;;  %4393 = vmatmul.mubr.msk.f32.gmra.mrb[14].mxu1 %vm242_vm1, %v5375_v43 }
  0x5c   : > { %4293 = vmatprep.mubr.msk.f32.mxu0 %vm242_vm1, %v5133_v5  ;;  %4397 = vmatprep.mubr.msk.f32.mxu1 %vm242_vm1, %v5143_v8  ;;  %v5697_v5 = vld [vmem:[%s5129_s28 + $0x9a] sm:$0xff] }
  0x5f   : > { %4294 = vmatmul.mubr.msk.f32.vlgmr.msra.gmra.mrb[0].mxu0 %vm242_vm1, %v5140_v7  ;;  %4398 = vmatmul.mubr.msk.f32.vlgmr.msra.gmra.mrb[0].mxu1 %vm242_vm1, %v5157_v11  ;;  %v5711_v7 = vld [vmem:[%s5129_s28 + $0xb2] sm:$0xff] }
  0x60   : > { %4318 = vmatpush3.msk.msra.mxu0 %vm291_vm0, %v3677_v29  ;;  %4422 = vmatpush3.msk.msra.mxu1 %vm291_vm0, %v3749_v30 }
  0x61   : > { %4296 = vmatprep.mubr.msk.f32.mxu0 %vm242_vm1, %v5143_v8  ;;  %4400 = vmatprep.mubr.msk.f32.mxu1 %vm242_vm1, %v5164_v12  ;;  %v5714_v8 = vld [vmem:[%s5129_s28 + $0xc2] sm:$0xff] }
  0x62   : > { %4447 = vmatprep.subr.msk.mxu0 %vm291_vm0, %v3783_v44  ;;  %4551 = vmatprep.subr.msk.mxu1 %vm291_vm0, %v3871_v45 }
  0x63   : > { %4297 = vmatmul.mubr.msk.f32.gmra.mrb[2].mxu0 %vm242_vm1, %v5157_v11  ;;  %4401 = vmatmul.mubr.msk.f32.gmra.mrb[2].mxu1 %vm242_vm1, %v5177_v13  ;;  %v1762_v11 = vld [vmem:[%s5129_s28 + $0xe2] sm:$0xff]  ;;  %s5871_s28 = scalar_lea.vmem [#allocation2], %s3621_s21 }
  0x64   : > { %4299 = vmatprep.mubr.msk.f32.mxu0 %vm242_vm1, %v5164_v12  ;;  %4403 = vmatprep.mubr.msk.f32.mxu1 %vm242_vm1, %v5180_v14  ;;  %v5865_v12 = vld [vmem:[%s6221_s2] ss:$0 sm:$0xff] }
  0x67   : > { %4300 = vmatmul.mubr.msk.f32.gmra.mrb[4].mxu0 %vm242_vm1, %v5177_v13  ;;  %4404 = vmatmul.mubr.msk.f32.gmra.mrb[4].mxu1 %vm242_vm1, %v5191_v15 }
  0x68   : > { %4302 = vmatprep.mubr.msk.f32.mxu0 %vm242_vm1, %v5180_v14  ;;  %4406 = vmatprep.mubr.msk.f32.mxu1 %vm242_vm1, %v5194_v16 }
  0x6b   : > { %4303 = vmatmul.mubr.msk.f32.gmra.mrb[6].mxu0 %vm242_vm1, %v5191_v15  ;;  %4407 = vmatmul.mubr.msk.f32.gmra.mrb[6].mxu1 %vm242_vm1, %v5205_v17 }
  0x6c   : > { %4305 = vmatprep.mubr.msk.f32.mxu0 %vm242_vm1, %v5194_v16  ;;  %4409 = vmatprep.mubr.msk.f32.mxu1 %vm242_vm1, %v5208_v18 }
  0x6f   : > { %4306 = vmatmul.mubr.msk.f32.gmra.mrb[8].mxu0 %vm242_vm1, %v5205_v17  ;;  %4410 = vmatmul.mubr.msk.f32.gmra.mrb[8].mxu1 %vm242_vm1, %v5219_v19 }
  0x70   : > { %4308 = vmatprep.mubr.msk.f32.mxu0 %vm242_vm1, %v5208_v18  ;;  %4412 = vmatprep.mubr.msk.f32.mxu1 %vm242_vm1, %v5222_v20 }
  0x73   : > { %4309 = vmatmul.mubr.msk.f32.gmra.mrb[10].mxu0 %vm242_vm1, %v5219_v19  ;;  %4413 = vmatmul.mubr.msk.f32.gmra.mrb[10].mxu1 %vm242_vm1, %v5233_v21 }
  0x74   : > { %4311 = vmatprep.mubr.msk.f32.mxu0 %vm242_vm1, %v5222_v20  ;;  %4415 = vmatprep.mubr.msk.f32.mxu1 %vm242_vm1, %v5236_v22 }
  0x77   : > { %4312 = vmatmul.mubr.msk.f32.gmra.mrb[12].mxu0 %vm242_vm1, %v5233_v21  ;;  %4416 = vmatmul.mubr.msk.f32.gmra.mrb[12].mxu1 %vm242_vm1, %v5247_v23 }
  0x78   : > { %4314 = vmatprep.mubr.msk.f32.mxu0 %vm242_vm1, %v5236_v22  ;;  %4418 = vmatprep.mubr.msk.f32.mxu1 %vm242_vm1, %v219_v46 }
  0x7b   : > { %4315 = vmatmul.mubr.msk.f32.gmra.mrb[14].mxu0 %vm242_vm1, %v5247_v23  ;;  %4419 = vmatmul.mubr.msk.f32.gmra.mrb[14].mxu1 %vm242_vm1, %v220_v47 }
  0x7c   : > { %4319 = vmatprep.mubr.msk.f32.mxu0 %vm242_vm1, %v5253_v25  ;;  %4423 = vmatprep.mubr.msk.f32.mxu1 %vm242_vm1, %v5270_v28 }
  0x7f   : > { %4320 = vmatmul.mubr.msk.f32.vlgmr.msra.gmra.mrb[0].mxu0 %vm242_vm1, %v5267_v27  ;;  %4424 = vmatmul.mubr.msk.f32.vlgmr.msra.gmra.mrb[0].mxu1 %vm242_vm1, %v5285_v31 }
  0x80   : > { %4448 = vmatpush3.msk.msra.mxu0 %vm291_vm0, %v3783_v44  ;;  %4552 = vmatpush3.msk.msra.mxu1 %vm291_vm0, %v3871_v45 }
  0x81   : > { %4322 = vmatprep.mubr.msk.f32.mxu0 %vm242_vm1, %v5270_v28  ;;  %4426 = vmatprep.mubr.msk.f32.mxu1 %vm242_vm1, %v5292_v32 }
  0x82   : > { %4473 = vmatprep.subr.msk.mxu0 %vm291_vm0, %v3801_v48  ;;  %4577 = vmatprep.subr.msk.mxu1 %vm291_vm0, %v3889_v49 }
  0x83   : > { %4323 = vmatmul.mubr.msk.f32.gmra.mrb[2].mxu0 %vm242_vm1, %v5285_v31  ;;  %4427 = vmatmul.mubr.msk.f32.gmra.mrb[2].mxu1 %vm242_vm1, %v5305_v33 }
  0x84   : > { %4325 = vmatprep.mubr.msk.f32.mxu0 %vm242_vm1, %v5292_v32  ;;  %4429 = vmatprep.mubr.msk.f32.mxu1 %vm242_vm1, %v5308_v34 }
  0x87   : > { %4326 = vmatmul.mubr.msk.f32.gmra.mrb[4].mxu0 %vm242_vm1, %v5305_v33  ;;  %4430 = vmatmul.mubr.msk.f32.gmra.mrb[4].mxu1 %vm242_vm1, %v5319_v35 }
  0x88   : > { %4328 = vmatprep.mubr.msk.f32.mxu0 %vm242_vm1, %v5308_v34  ;;  %4432 = vmatprep.mubr.msk.f32.mxu1 %vm242_vm1, %v5322_v36 }
  0x8b   : > { %4329 = vmatmul.mubr.msk.f32.gmra.mrb[6].mxu0 %vm242_vm1, %v5319_v35  ;;  %4433 = vmatmul.mubr.msk.f32.gmra.mrb[6].mxu1 %vm242_vm1, %v5333_v37 }
  0x8c   : > { %4331 = vmatprep.mubr.msk.f32.mxu0 %vm242_vm1, %v5322_v36  ;;  %4435 = vmatprep.mubr.msk.f32.mxu1 %vm242_vm1, %v5336_v38 }
  0x8f   : > { %4332 = vmatmul.mubr.msk.f32.gmra.mrb[8].mxu0 %vm242_vm1, %v5333_v37  ;;  %4436 = vmatmul.mubr.msk.f32.gmra.mrb[8].mxu1 %vm242_vm1, %v5347_v39 }
  0x90   : > { %4334 = vmatprep.mubr.msk.f32.mxu0 %vm242_vm1, %v5336_v38  ;;  %4438 = vmatprep.mubr.msk.f32.mxu1 %vm242_vm1, %v5350_v40 }
  0x93   : > { %4335 = vmatmul.mubr.msk.f32.gmra.mrb[10].mxu0 %vm242_vm1, %v5347_v39  ;;  %4439 = vmatmul.mubr.msk.f32.gmra.mrb[10].mxu1 %vm242_vm1, %v5361_v41 }
  0x94   : > { %4337 = vmatprep.mubr.msk.f32.mxu0 %vm242_vm1, %v5350_v40  ;;  %4441 = vmatprep.mubr.msk.f32.mxu1 %vm242_vm1, %v5364_v42 }
  0x97   : > { %4338 = vmatmul.mubr.msk.f32.gmra.mrb[12].mxu0 %vm242_vm1, %v5361_v41  ;;  %4442 = vmatmul.mubr.msk.f32.gmra.mrb[12].mxu1 %vm242_vm1, %v5375_v43 }
  0x98   : > { %4340 = vmatprep.mubr.msk.f32.mxu0 %vm242_vm1, %v5364_v42  ;;  %4444 = vmatprep.mubr.msk.f32.mxu1 %vm242_vm1, %v5518_v50 }
  0x9b   : > { %4341 = vmatmul.mubr.msk.f32.gmra.mrb[14].mxu0 %vm242_vm1, %v5375_v43  ;;  %4445 = vmatmul.mubr.msk.f32.gmra.mrb[14].mxu1 %vm242_vm1, %v5529_v51 }
  0x9c   : > { %4449 = vmatprep.mubr.msk.f32.mxu0 %vm242_vm1, %v5250_v24  ;;  %4553 = vmatprep.mubr.msk.f32.mxu1 %vm242_vm1, %v5253_v25 }
  0x9f   : > { %4450 = vmatmul.mubr.msk.f32.vlgmr.msra.gmra.mrb[16].mxu0 %vm242_vm1, %v5264_v26  ;;  %4554 = vmatmul.mubr.msk.f32.vlgmr.msra.gmra.mrb[16].mxu1 %vm242_vm1, %v5267_v27 }
  0xa0   : > { %4474 = vmatpush3.msk.msra.mxu0 %vm291_vm0, %v3801_v48  ;;  %4578 = vmatpush3.msk.msra.mxu1 %vm291_vm0, %v3889_v49 }
  0xa1   : > { %4452 = vmatprep.mubr.msk.f32.mxu0 %vm242_vm1, %v5253_v25  ;;  %4556 = vmatprep.mubr.msk.f32.mxu1 %vm242_vm1, %v5270_v28 }
  0xa2   : > { %4499 = vmatprep.subr.msk.mxu0 %vm291_vm0, %v3819_v52  ;;  %4603 = vmatprep.subr.msk.mxu1 %vm291_vm0, %v3907_v53 }
  0xa3   : > { %4453 = vmatmul.mubr.msk.f32.gmra.mrb[18].mxu0 %vm242_vm1, %v5267_v27  ;;  %4557 = vmatmul.mubr.msk.f32.gmra.mrb[18].mxu1 %vm242_vm1, %v5285_v31 }
  0xa4   : > { %4455 = vmatprep.mubr.msk.f32.mxu0 %vm242_vm1, %v5270_v28  ;;  %4559 = vmatprep.mubr.msk.f32.mxu1 %vm242_vm1, %v5292_v32 }
  0xa7   : > { %4456 = vmatmul.mubr.msk.f32.gmra.mrb[20].mxu0 %vm242_vm1, %v5285_v31  ;;  %4560 = vmatmul.mubr.msk.f32.gmra.mrb[20].mxu1 %vm242_vm1, %v5305_v33 }
  0xa8   : > { %4458 = vmatprep.mubr.msk.f32.mxu0 %vm242_vm1, %v5292_v32  ;;  %4562 = vmatprep.mubr.msk.f32.mxu1 %vm242_vm1, %v5308_v34 }
  0xab   : > { %4459 = vmatmul.mubr.msk.f32.gmra.mrb[22].mxu0 %vm242_vm1, %v5305_v33  ;;  %4563 = vmatmul.mubr.msk.f32.gmra.mrb[22].mxu1 %vm242_vm1, %v5319_v35 }
  0xac   : > { %4461 = vmatprep.mubr.msk.f32.mxu0 %vm242_vm1, %v5308_v34  ;;  %4565 = vmatprep.mubr.msk.f32.mxu1 %vm242_vm1, %v5322_v36 }
  0xaf   : > { %4462 = vmatmul.mubr.msk.f32.gmra.mrb[24].mxu0 %vm242_vm1, %v5319_v35  ;;  %4566 = vmatmul.mubr.msk.f32.gmra.mrb[24].mxu1 %vm242_vm1, %v5333_v37 }
  0xb0   : > { %4464 = vmatprep.mubr.msk.f32.mxu0 %vm242_vm1, %v5322_v36  ;;  %4568 = vmatprep.mubr.msk.f32.mxu1 %vm242_vm1, %v5336_v38 }
  0xb3   : > { %4465 = vmatmul.mubr.msk.f32.gmra.mrb[26].mxu0 %vm242_vm1, %v5333_v37  ;;  %4569 = vmatmul.mubr.msk.f32.gmra.mrb[26].mxu1 %vm242_vm1, %v5347_v39 }
  0xb4   : > { %4467 = vmatprep.mubr.msk.f32.mxu0 %vm242_vm1, %v5336_v38  ;;  %4571 = vmatprep.mubr.msk.f32.mxu1 %vm242_vm1, %v5350_v40 }
  0xb7   : > { %4468 = vmatmul.mubr.msk.f32.gmra.mrb[28].mxu0 %vm242_vm1, %v5347_v39  ;;  %4572 = vmatmul.mubr.msk.f32.gmra.mrb[28].mxu1 %vm242_vm1, %v5361_v41 }
  0xb8   : > { %4470 = vmatprep.mubr.msk.f32.mxu0 %vm242_vm1, %v5350_v40  ;;  %4574 = vmatprep.mubr.msk.f32.mxu1 %vm242_vm1, %v5364_v42 }
  0xbb   : > { %4471 = vmatmul.mubr.msk.f32.gmra.mrb[30].mxu0 %vm242_vm1, %v5361_v41  ;;  %4575 = vmatmul.mubr.msk.f32.gmra.mrb[30].mxu1 %vm242_vm1, %v5375_v43 }
  0xbc   : > { %4475 = vmatprep.mubr.msk.f32.mxu0 %vm242_vm1, %v1743_v54  ;;  %4579 = vmatprep.mubr.msk.f32.mxu1 %vm242_vm1, %v5607_v55 }
  0xbf   : > { %4476 = vmatmul.mubr.msk.f32.vlgmr.msra.gmra.mrb[16].mxu0 %vm242_vm1, %v1744_v56  ;;  %4580 = vmatmul.mubr.msk.f32.vlgmr.msra.gmra.mrb[16].mxu1 %vm242_vm1, %v5618_v57 }
  0xc0   : > { %4500 = vmatpush3.msk.msra.mxu0 %vm291_vm0, %v3819_v52  ;;  %4604 = vmatpush3.msk.msra.mxu1 %vm291_vm0, %v3907_v53 }
  0xc1   : > { %4478 = vmatprep.mubr.msk.f32.mxu0 %vm242_vm1, %v5607_v55  ;;  %4582 = vmatprep.mubr.msk.f32.mxu1 %vm242_vm1, %v5621_v58 }
  0xc2   : > { %4525 = vmatprep.subr.msk.mxu0 %vm291_vm0, %v3837_v59  ;;  %4629 = vmatprep.subr.msk.mxu1 %vm291_vm0, %v3925_v60 }
  0xc3   : > { %4479 = vmatmul.mubr.msk.f32.gmra.mrb[18].mxu0 %vm242_vm1, %v5618_v57  ;;  %4583 = vmatmul.mubr.msk.f32.gmra.mrb[18].mxu1 %vm242_vm1, %v5635_v61 }
  0xc4   : > { %4481 = vmatprep.mubr.msk.f32.mxu0 %vm242_vm1, %v5621_v58  ;;  %4585 = vmatprep.mubr.msk.f32.mxu1 %vm242_vm1, %v5642_v62 }
  0xc7   : > { %4482 = vmatmul.mubr.msk.f32.gmra.mrb[20].mxu0 %vm242_vm1, %v5635_v61  ;;  %4586 = vmatmul.mubr.msk.f32.gmra.mrb[20].mxu1 %vm242_vm1, %v5655_v63 }
  0xc8   : > { %4484 = vmatprep.mubr.msk.f32.mxu0 %vm242_vm1, %v5642_v62  ;;  %4588 = vmatprep.mubr.msk.f32.mxu1 %vm242_vm1, %v5658_v0 }
  0xcb   : > { %4485 = vmatmul.mubr.msk.f32.gmra.mrb[22].mxu0 %vm242_vm1, %v5655_v63  ;;  %4589 = vmatmul.mubr.msk.f32.gmra.mrb[22].mxu1 %vm242_vm1, %v5669_v1 }
  0xcc   : > { %4487 = vmatprep.mubr.msk.f32.mxu0 %vm242_vm1, %v5658_v0  ;;  %4591 = vmatprep.mubr.msk.f32.mxu1 %vm242_vm1, %v5672_v2 }
  0xcf   : > { %4488 = vmatmul.mubr.msk.f32.gmra.mrb[24].mxu0 %vm242_vm1, %v5669_v1  ;;  %4592 = vmatmul.mubr.msk.f32.gmra.mrb[24].mxu1 %vm242_vm1, %v5683_v3 }
  0xd0   : > { %4490 = vmatprep.mubr.msk.f32.mxu0 %vm242_vm1, %v5672_v2  ;;  %4594 = vmatprep.mubr.msk.f32.mxu1 %vm242_vm1, %v5686_v4 }
  0xd3   : > { %4491 = vmatmul.mubr.msk.f32.gmra.mrb[26].mxu0 %vm242_vm1, %v5683_v3  ;;  %4595 = vmatmul.mubr.msk.f32.gmra.mrb[26].mxu1 %vm242_vm1, %v5697_v5 }
  0xd4   : > { %4493 = vmatprep.mubr.msk.f32.mxu0 %vm242_vm1, %v5686_v4  ;;  %4597 = vmatprep.mubr.msk.f32.mxu1 %vm242_vm1, %v5700_v6 }
  0xd7   : > { %4494 = vmatmul.mubr.msk.f32.gmra.mrb[28].mxu0 %vm242_vm1, %v5697_v5  ;;  %4598 = vmatmul.mubr.msk.f32.gmra.mrb[28].mxu1 %vm242_vm1, %v5711_v7 }
  0xd8   : > { %4496 = vmatprep.mubr.msk.f32.mxu0 %vm242_vm1, %v5700_v6  ;;  %4600 = vmatprep.mubr.msk.f32.mxu1 %vm242_vm1, %v5714_v8 }
  0xdb   : > { %4497 = vmatmul.mubr.msk.f32.gmra.mrb[30].mxu0 %vm242_vm1, %v5711_v7  ;;  %4601 = vmatmul.mubr.msk.f32.gmra.mrb[30].mxu1 %vm242_vm1, %v5725_v9 }
  0xdc   : > { %4501 = vmatprep.mubr.msk.f32.mxu0 %vm242_vm1, %v5253_v25  ;;  %4605 = vmatprep.mubr.msk.f32.mxu1 %vm242_vm1, %v5270_v28 }
  0xdf   : > { %4502 = vmatmul.mubr.msk.f32.vlgmr.msra.gmra.mrb[16].mxu0 %vm242_vm1, %v5267_v27  ;;  %4606 = vmatmul.mubr.msk.f32.vlgmr.msra.gmra.mrb[16].mxu1 %vm242_vm1, %v5285_v31 }
  0xe0   : > { %4526 = vmatpush3.msk.msra.mxu0 %vm291_vm0, %v3837_v59  ;;  %4630 = vmatpush3.msk.msra.mxu1 %vm291_vm0, %v3925_v60 }
  0xe1   : > { %4504 = vmatprep.mubr.msk.f32.mxu0 %vm242_vm1, %v5270_v28  ;;  %4608 = vmatprep.mubr.msk.f32.mxu1 %vm242_vm1, %v5292_v32 }
  0xe3   : > { %4505 = vmatmul.mubr.msk.f32.gmra.mrb[18].mxu0 %vm242_vm1, %v5285_v31  ;;  %4609 = vmatmul.mubr.msk.f32.gmra.mrb[18].mxu1 %vm242_vm1, %v5305_v33 }
  0xe4   : > { %4507 = vmatprep.mubr.msk.f32.mxu0 %vm242_vm1, %v5292_v32  ;;  %4611 = vmatprep.mubr.msk.f32.mxu1 %vm242_vm1, %v5308_v34 }
  0xe7   : > { %4508 = vmatmul.mubr.msk.f32.gmra.mrb[20].mxu0 %vm242_vm1, %v5305_v33  ;;  %4612 = vmatmul.mubr.msk.f32.gmra.mrb[20].mxu1 %vm242_vm1, %v5319_v35 }
  0xe8   : > { %4510 = vmatprep.mubr.msk.f32.mxu0 %vm242_vm1, %v5308_v34  ;;  %4614 = vmatprep.mubr.msk.f32.mxu1 %vm242_vm1, %v5322_v36 }
  0xeb   : > { %4511 = vmatmul.mubr.msk.f32.gmra.mrb[22].mxu0 %vm242_vm1, %v5319_v35  ;;  %4615 = vmatmul.mubr.msk.f32.gmra.mrb[22].mxu1 %vm242_vm1, %v5333_v37 }
  0xec   : > { %4513 = vmatprep.mubr.msk.f32.mxu0 %vm242_vm1, %v5322_v36  ;;  %4617 = vmatprep.mubr.msk.f32.mxu1 %vm242_vm1, %v5336_v38 }
  0xef   : > { %4514 = vmatmul.mubr.msk.f32.gmra.mrb[24].mxu0 %vm242_vm1, %v5333_v37  ;;  %4618 = vmatmul.mubr.msk.f32.gmra.mrb[24].mxu1 %vm242_vm1, %v5347_v39 }
  0xf0   : > { %4516 = vmatprep.mubr.msk.f32.mxu0 %vm242_vm1, %v5336_v38  ;;  %4620 = vmatprep.mubr.msk.f32.mxu1 %vm242_vm1, %v5350_v40 }
  0xf3   : > { %4517 = vmatmul.mubr.msk.f32.gmra.mrb[26].mxu0 %vm242_vm1, %v5347_v39  ;;  %4621 = vmatmul.mubr.msk.f32.gmra.mrb[26].mxu1 %vm242_vm1, %v5361_v41 }
  0xf4   : > { %4519 = vmatprep.mubr.msk.f32.mxu0 %vm242_vm1, %v5350_v40  ;;  %4623 = vmatprep.mubr.msk.f32.mxu1 %vm242_vm1, %v5364_v42 }
  0xf7   : > { %4520 = vmatmul.mubr.msk.f32.gmra.mrb[28].mxu0 %vm242_vm1, %v5361_v41  ;;  %4624 = vmatmul.mubr.msk.f32.gmra.mrb[28].mxu1 %vm242_vm1, %v5375_v43 }
  0xf8   : > { %4522 = vmatprep.mubr.msk.f32.mxu0 %vm242_vm1, %v5364_v42  ;;  %4626 = vmatprep.mubr.msk.f32.mxu1 %vm242_vm1, %v5518_v50 }
  0xfb   : > { %4523 = vmatmul.mubr.msk.f32.gmra.mrb[30].mxu0 %vm242_vm1, %v5375_v43  ;;  %4627 = vmatmul.mubr.msk.f32.gmra.mrb[30].mxu1 %vm242_vm1, %v5529_v51 }
  0xfc   : > { %4527 = vmatprep.mubr.msk.f32.mxu0 %vm242_vm1, %v5607_v55  ;;  %4631 = vmatprep.mubr.msk.f32.mxu1 %vm242_vm1, %v5621_v58 }
  0xff   : > { %4528 = vmatmul.mubr.msk.f32.vlgmr.msra.gmra.mrb[16].mxu0 %vm242_vm1, %v5618_v57  ;;  %4632 = vmatmul.mubr.msk.f32.vlgmr.msra.gmra.mrb[16].mxu1 %vm242_vm1, %v5635_v61 }
 0x100   : > { %4530 = vmatprep.mubr.msk.f32.mxu0 %vm242_vm1, %v5621_v58  ;;  %4634 = vmatprep.mubr.msk.f32.mxu1 %vm242_vm1, %v5642_v62 }
 0x103   : > { %4531 = vmatmul.mubr.msk.f32.gmra.mrb[18].mxu0 %vm242_vm1, %v5635_v61  ;;  %4635 = vmatmul.mubr.msk.f32.gmra.mrb[18].mxu1 %vm242_vm1, %v5655_v63 }
 0x104   : > { %4533 = vmatprep.mubr.msk.f32.mxu0 %vm242_vm1, %v5642_v62  ;;  %4637 = vmatprep.mubr.msk.f32.mxu1 %vm242_vm1, %v5658_v0 }
 0x107   : > { %4534 = vmatmul.mubr.msk.f32.gmra.mrb[20].mxu0 %vm242_vm1, %v5655_v63  ;;  %4638 = vmatmul.mubr.msk.f32.gmra.mrb[20].mxu1 %vm242_vm1, %v5669_v1 }
 0x108   : > { %4536 = vmatprep.mubr.msk.f32.mxu0 %vm242_vm1, %v5658_v0  ;;  %4640 = vmatprep.mubr.msk.f32.mxu1 %vm242_vm1, %v5672_v2 }
 0x10b   : > { %4537 = vmatmul.mubr.msk.f32.gmra.mrb[22].mxu0 %vm242_vm1, %v5669_v1  ;;  %4641 = vmatmul.mubr.msk.f32.gmra.mrb[22].mxu1 %vm242_vm1, %v5683_v3 }
 0x10c   : > { %4539 = vmatprep.mubr.msk.f32.mxu0 %vm242_vm1, %v5672_v2  ;;  %4643 = vmatprep.mubr.msk.f32.mxu1 %vm242_vm1, %v5686_v4 }
 0x10f   : > { %4540 = vmatmul.mubr.msk.f32.gmra.mrb[24].mxu0 %vm242_vm1, %v5683_v3  ;;  %4644 = vmatmul.mubr.msk.f32.gmra.mrb[24].mxu1 %vm242_vm1, %v5697_v5 }
 0x110   : > { %4542 = vmatprep.mubr.msk.f32.mxu0 %vm242_vm1, %v5686_v4  ;;  %4646 = vmatprep.mubr.msk.f32.mxu1 %vm242_vm1, %v5700_v6 }
 0x113   : > { %4543 = vmatmul.mubr.msk.f32.gmra.mrb[26].mxu0 %vm242_vm1, %v5697_v5  ;;  %4647 = vmatmul.mubr.msk.f32.gmra.mrb[26].mxu1 %vm242_vm1, %v5711_v7 }
 0x114   : > { %4545 = vmatprep.mubr.msk.f32.mxu0 %vm242_vm1, %v5700_v6  ;;  %4649 = vmatprep.mubr.msk.f32.mxu1 %vm242_vm1, %v5714_v8 }
 0x117   : > { %4546 = vmatmul.mubr.msk.f32.gmra.mrb[28].mxu0 %vm242_vm1, %v5711_v7  ;;  %4650 = vmatmul.mubr.msk.f32.gmra.mrb[28].mxu1 %vm242_vm1, %v5725_v9 }
 0x118   : > { %4548 = vmatprep.mubr.msk.f32.mxu0 %vm242_vm1, %v5714_v8  ;;  %4652 = vmatprep.mubr.msk.f32.mxu1 %vm242_vm1, %v1761_v10 }
 0x11b   : > { %4549 = vmatmul.mubr.msk.f32.gmra.mrb[30].mxu0 %vm242_vm1, %v5725_v9  ;;  %4653 = vmatmul.mubr.msk.f32.gmra.mrb[30].mxu1 %vm242_vm1, %v1762_v11 }
 0x152   : > { %v4321_v13 = vpop.f32.mrb[0].mxu0  ;;  %v4425_v14 = vpop.f32.mrb[0].mxu1 }
 0x153   : > { %v4655_v15 = vadd.f32 %v4321_v13, %v5865_v12  ;;  %v4671_v16 = vadd.f32 %v4425_v14, %v5865_v12  ;;  %v919_v17 = vpop.f32.mrb[1].mxu0  ;;  %v1611_v18 = vpop.f32.mrb[1].mxu1 }
 0x154   : > { %v4656_v19 = vadd.f32 %v5865_v12, %v919_v17  ;;  %v4672_v20 = vadd.f32 %v5865_v12, %v1611_v18 }
 0x155   : > { %1015 = vst.msk [vmem:[%s5871_s28 + $0x8] sm:$0xff] %vm242_vm1, %v4655_v15  ;;  %3768 = vst.msk [vmem:[%s5871_s28 + $0x108] sm:$0xff] %vm242_vm1, %v4671_v16 }
 0x156   : > { %1014 = vst.msk [vmem:[%s5871_s28] sm:$0xff] %vm242_vm1, %v4656_v19  ;;  %3767 = vst.msk [vmem:[%s5871_s28 + $0x100] sm:$0xff] %vm242_vm1, %v4672_v20  ;;  %v4324_v21 = vpop.f32.mrb[2].mxu0  ;;  %v4428_v22 = vpop.f32.mrb[2].mxu1 }
 0x157   : > { %v4657_v23 = vadd.f32 %v4324_v21, %v5865_v12  ;;  %v4673_v24 = vadd.f32 %v4428_v22, %v5865_v12  ;;  %v929_v25 = vpop.f32.mrb[3].mxu0  ;;  %v1621_v26 = vpop.f32.mrb[3].mxu1 }
 0x158   : > { %v4658_v27 = vadd.f32 %v5865_v12, %v929_v25  ;;  %v4674_v28 = vadd.f32 %v5865_v12, %v1621_v26 }
 0x159   : > { %1017 = vst.msk [vmem:[%s5871_s28 + $0x18] sm:$0xff] %vm242_vm1, %v4657_v23  ;;  %3770 = vst.msk [vmem:[%s5871_s28 + $0x118] sm:$0xff] %vm242_vm1, %v4673_v24 }
 0x15a   : > { %1016 = vst.msk [vmem:[%s5871_s28 + $0x10] sm:$0xff] %vm242_vm1, %v4658_v27  ;;  %3769 = vst.msk [vmem:[%s5871_s28 + $0x110] sm:$0xff] %vm242_vm1, %v4674_v28  ;;  %v4327_v29 = vpop.f32.mrb[4].mxu0  ;;  %v4431_v30 = vpop.f32.mrb[4].mxu1 }
 0x15b   : > { %v4659_v31 = vadd.f32 %v4327_v29, %v5865_v12  ;;  %v4675_v32 = vadd.f32 %v4431_v30, %v5865_v12  ;;  %v939_v33 = vpop.f32.mrb[5].mxu0  ;;  %v1631_v34 = vpop.f32.mrb[5].mxu1 }
 0x15c   : > { %v4660_v35 = vadd.f32 %v5865_v12, %v939_v33  ;;  %v4676_v36 = vadd.f32 %v5865_v12, %v1631_v34 }
 0x15d   : > { %1019 = vst.msk [vmem:[%s5871_s28 + $0x28] sm:$0xff] %vm242_vm1, %v4659_v31  ;;  %3772 = vst.msk [vmem:[%s5871_s28 + $0x128] sm:$0xff] %vm242_vm1, %v4675_v32 }
 0x15e   : > { %1018 = vst.msk [vmem:[%s5871_s28 + $0x20] sm:$0xff] %vm242_vm1, %v4660_v35  ;;  %3771 = vst.msk [vmem:[%s5871_s28 + $0x120] sm:$0xff] %vm242_vm1, %v4676_v36  ;;  %v4330_v37 = vpop.f32.mrb[6].mxu0  ;;  %v4434_v38 = vpop.f32.mrb[6].mxu1 }
 0x15f   : > { %v4661_v39 = vadd.f32 %v4330_v37, %v5865_v12  ;;  %v4677_v40 = vadd.f32 %v4434_v38, %v5865_v12  ;;  %v949_v41 = vpop.f32.mrb[7].mxu0  ;;  %v1641_v42 = vpop.f32.mrb[7].mxu1 }
 0x160   : > { %v4662_v43 = vadd.f32 %v5865_v12, %v949_v41  ;;  %v4678_v44 = vadd.f32 %v5865_v12, %v1641_v42 }
 0x161   : > { %1021 = vst.msk [vmem:[%s5871_s28 + $0x38] sm:$0xff] %vm242_vm1, %v4661_v39  ;;  %3774 = vst.msk [vmem:[%s5871_s28 + $0x138] sm:$0xff] %vm242_vm1, %v4677_v40 }
 0x162   : > { %1020 = vst.msk [vmem:[%s5871_s28 + $0x30] sm:$0xff] %vm242_vm1, %v4662_v43  ;;  %3773 = vst.msk [vmem:[%s5871_s28 + $0x130] sm:$0xff] %vm242_vm1, %v4678_v44  ;;  %v4333_v45 = vpop.f32.mrb[8].mxu0  ;;  %v4437_v46 = vpop.f32.mrb[8].mxu1 }
 0x163   : > { %v4663_v47 = vadd.f32 %v4333_v45, %v5865_v12  ;;  %v4679_v48 = vadd.f32 %v4437_v46, %v5865_v12  ;;  %v959_v49 = vpop.f32.mrb[9].mxu0  ;;  %v1651_v50 = vpop.f32.mrb[9].mxu1 }
 0x164   : > { %v4664_v51 = vadd.f32 %v5865_v12, %v959_v49  ;;  %v4680_v52 = vadd.f32 %v5865_v12, %v1651_v50 }
 0x165   : > { %1023 = vst.msk [vmem:[%s5871_s28 + $0x48] sm:$0xff] %vm242_vm1, %v4663_v47  ;;  %3776 = vst.msk [vmem:[%s5871_s28 + $0x148] sm:$0xff] %vm242_vm1, %v4679_v48 }
 0x166   : > { %1022 = vst.msk [vmem:[%s5871_s28 + $0x40] sm:$0xff] %vm242_vm1, %v4664_v51  ;;  %3775 = vst.msk [vmem:[%s5871_s28 + $0x140] sm:$0xff] %vm242_vm1, %v4680_v52  ;;  %v4336_v53 = vpop.f32.mrb[10].mxu0  ;;  %v4440_v54 = vpop.f32.mrb[10].mxu1 }
 0x167   : > { %v4665_v55 = vadd.f32 %v4336_v53, %v5865_v12  ;;  %v4681_v56 = vadd.f32 %v4440_v54, %v5865_v12  ;;  %v969_v57 = vpop.f32.mrb[11].mxu0  ;;  %v1661_v58 = vpop.f32.mrb[11].mxu1 }
 0x168   : > { %v4666_v59 = vadd.f32 %v5865_v12, %v969_v57  ;;  %v4682_v60 = vadd.f32 %v5865_v12, %v1661_v58 }
 0x169   : > { %1025 = vst.msk [vmem:[%s5871_s28 + $0x58] sm:$0xff] %vm242_vm1, %v4665_v55  ;;  %3778 = vst.msk [vmem:[%s5871_s28 + $0x158] sm:$0xff] %vm242_vm1, %v4681_v56 }
 0x16a   : > { %1024 = vst.msk [vmem:[%s5871_s28 + $0x50] sm:$0xff] %vm242_vm1, %v4666_v59  ;;  %3777 = vst.msk [vmem:[%s5871_s28 + $0x150] sm:$0xff] %vm242_vm1, %v4682_v60  ;;  %v4339_v61 = vpop.f32.mrb[12].mxu0  ;;  %v4443_v62 = vpop.f32.mrb[12].mxu1 }
 0x16b   : > { %v4667_v63 = vadd.f32 %v4339_v61, %v5865_v12  ;;  %v4683_v0 = vadd.f32 %v4443_v62, %v5865_v12  ;;  %v979_v1 = vpop.f32.mrb[13].mxu0  ;;  %v1671_v2 = vpop.f32.mrb[13].mxu1 }
 0x16c   : > { %v4668_v3 = vadd.f32 %v5865_v12, %v979_v1  ;;  %v4684_v4 = vadd.f32 %v5865_v12, %v1671_v2 }
 0x16d   : > { %1027 = vst.msk [vmem:[%s5871_s28 + $0x68] sm:$0xff] %vm242_vm1, %v4667_v63  ;;  %3780 = vst.msk [vmem:[%s5871_s28 + $0x168] sm:$0xff] %vm242_vm1, %v4683_v0 }
 0x16e   : > { %1026 = vst.msk [vmem:[%s5871_s28 + $0x60] sm:$0xff] %vm242_vm1, %v4668_v3  ;;  %3779 = vst.msk [vmem:[%s5871_s28 + $0x160] sm:$0xff] %vm242_vm1, %v4684_v4  ;;  %v4342_v5 = vpop.f32.mrb[14].mxu0  ;;  %v4446_v6 = vpop.f32.mrb[14].mxu1 }
 0x16f   : > { %v4669_v7 = vadd.f32 %v4342_v5, %v5865_v12  ;;  %v4685_v8 = vadd.f32 %v4446_v6, %v5865_v12  ;;  %v989_v9 = vpop.f32.mrb[15].mxu0  ;;  %v1681_v10 = vpop.f32.mrb[15].mxu1 }
 0x170   : > { %v4670_v11 = vadd.f32 %v5865_v12, %v989_v9  ;;  %v4686_v13 = vadd.f32 %v5865_v12, %v1681_v10 }
 0x171   : > { %1029 = vst.msk [vmem:[%s5871_s28 + $0x78] sm:$0xff] %vm242_vm1, %v4669_v7  ;;  %3782 = vst.msk [vmem:[%s5871_s28 + $0x178] sm:$0xff] %vm242_vm1, %v4685_v8 }
 0x172   : > { %1028 = vst.msk [vmem:[%s5871_s28 + $0x70] sm:$0xff] %vm242_vm1, %v4670_v11  ;;  %3781 = vst.msk [vmem:[%s5871_s28 + $0x170] sm:$0xff] %vm242_vm1, %v4686_v13 }
 0x1d2   : > { %v4529_v14 = vpop.f32.mrb[16].mxu0  ;;  %v4633_v15 = vpop.f32.mrb[16].mxu1 }
 0x1d3   : > { %v4687_v16 = vadd.f32 %v4529_v14, %v5865_v12  ;;  %v4703_v17 = vadd.f32 %v4633_v15, %v5865_v12  ;;  %v2440_v18 = vpop.f32.mrb[17].mxu0  ;;  %v3133_v19 = vpop.f32.mrb[17].mxu1  ;;  %v3413_v15 = vld [vmem:[%s5871_s28 + $0x8] sm:$0xff] (%p5091_p5) }
 0x1d4   : > { %v4688_v20 = vadd.f32 %v5865_v12, %v2440_v18  ;;  %v4704_v21 = vadd.f32 %v5865_v12, %v3133_v19  ;;  %v3419_v18 = vld [vmem:[%s5871_s28 + $0x20] sm:$0xff] (%p5091_p5)  ;;  %v3421_v19 = vld [vmem:[%s5871_s28 + $0x28] sm:$0xff] (%p5091_p5)  ;;  %3414 = vst [vmem:[%s6077_s4 + $0x8] sm:$0xff] (%p5091_p5), %v3413_v15 }
 0x1d5   : > { %3856 = vst.msk [vmem:[%s5871_s28 + $0x88] sm:$0xff] %vm242_vm1, %v4687_v16  ;;  %3944 = vst.msk [vmem:[%s5871_s28 + $0x188] sm:$0xff] %vm242_vm1, %v4703_v17  ;;  %v3415_v16 = vld [vmem:[%s5871_s28 + $0x10] sm:$0xff] (%p5091_p5)  ;;  %v3417_v17 = vld [vmem:[%s5871_s28 + $0x18] sm:$0xff] (%p5091_p5) }
 0x1d6   : > { %3855 = vst.msk [vmem:[%s5871_s28 + $0x80] sm:$0xff] %vm242_vm1, %v4688_v20  ;;  %3943 = vst.msk [vmem:[%s5871_s28 + $0x180] sm:$0xff] %vm242_vm1, %v4704_v21  ;;  %v4532_v22 = vpop.f32.mrb[18].mxu0  ;;  %v4636_v23 = vpop.f32.mrb[18].mxu1  ;;  %v3423_v20 = vld [vmem:[%s5871_s28 + $0x30] sm:$0xff] (%p5091_p5)  ;;  %v3425_v21 = vld [vmem:[%s5871_s28 + $0x38] sm:$0xff] (%p5091_p5) }
 0x1d7   : > { %v4689_v24 = vadd.f32 %v4532_v22, %v5865_v12  ;;  %v4705_v25 = vadd.f32 %v4636_v23, %v5865_v12  ;;  %v2450_v26 = vpop.f32.mrb[19].mxu0  ;;  %v3143_v27 = vpop.f32.mrb[19].mxu1  ;;  %v3427_v22 = vld [vmem:[%s5871_s28 + $0x40] sm:$0xff] (%p5091_p5)  ;;  %v3429_v23 = vld [vmem:[%s5871_s28 + $0x48] sm:$0xff] (%p5091_p5)  ;;  %3416 = vst [vmem:[%s6077_s4 + $0x10] sm:$0xff] (%p5091_p5), %v3415_v16  ;;  %3418 = vst [vmem:[%s6077_s4 + $0x18] sm:$0xff] (%p5091_p5), %v3417_v17 }
 0x1d8   : > { %v4690_v28 = vadd.f32 %v5865_v12, %v2450_v26  ;;  %v4706_v29 = vadd.f32 %v5865_v12, %v3143_v27  ;;  %3420 = vst [vmem:[%s6077_s4 + $0x20] sm:$0xff] (%p5091_p5), %v3419_v18  ;;  %3422 = vst [vmem:[%s6077_s4 + $0x28] sm:$0xff] (%p5091_p5), %v3421_v19  ;;  %v3435_v26 = vld [vmem:[%s5871_s28 + $0x60] sm:$0xff] (%p5091_p5)  ;;  %v3437_v27 = vld [vmem:[%s5871_s28 + $0x68] sm:$0xff] (%p5091_p5) }
 0x1d9   : > { %3858 = vst.msk [vmem:[%s5871_s28 + $0x98] sm:$0xff] %vm242_vm1, %v4689_v24  ;;  %3946 = vst.msk [vmem:[%s5871_s28 + $0x198] sm:$0xff] %vm242_vm1, %v4705_v25  ;;  %v3431_v24 = vld [vmem:[%s5871_s28 + $0x50] sm:$0xff] (%p5091_p5)  ;;  %v3433_v25 = vld [vmem:[%s5871_s28 + $0x58] sm:$0xff] (%p5091_p5) }
 0x1da   : > { %3857 = vst.msk [vmem:[%s5871_s28 + $0x90] sm:$0xff] %vm242_vm1, %v4690_v28  ;;  %3945 = vst.msk [vmem:[%s5871_s28 + $0x190] sm:$0xff] %vm242_vm1, %v4706_v29  ;;  %v4535_v30 = vpop.f32.mrb[20].mxu0  ;;  %v4639_v31 = vpop.f32.mrb[20].mxu1  ;;  %v3439_v28 = vld [vmem:[%s5871_s28 + $0x70] sm:$0xff] (%p5091_p5)  ;;  %v3441_v29 = vld [vmem:[%s5871_s28 + $0x78] sm:$0xff] (%p5091_p5) }
 0x1db   : > { %v4691_v32 = vadd.f32 %v4535_v30, %v5865_v12  ;;  %v4707_v33 = vadd.f32 %v4639_v31, %v5865_v12  ;;  %v2460_v34 = vpop.f32.mrb[21].mxu0  ;;  %v3153_v35 = vpop.f32.mrb[21].mxu1  ;;  %3424 = vst [vmem:[%s6077_s4 + $0x30] sm:$0xff] (%p5091_p5), %v3423_v20  ;;  %3426 = vst [vmem:[%s6077_s4 + $0x38] sm:$0xff] (%p5091_p5), %v3425_v21 }
 0x1dc   : > { %v4692_v36 = vadd.f32 %v5865_v12, %v2460_v34  ;;  %v4708_v37 = vadd.f32 %v5865_v12, %v3153_v35  ;;  %3428 = vst [vmem:[%s6077_s4 + $0x40] sm:$0xff] (%p5091_p5), %v3427_v22  ;;  %3430 = vst [vmem:[%s6077_s4 + $0x48] sm:$0xff] (%p5091_p5), %v3429_v23  ;;  %v3445_v31 = vld [vmem:[%s5871_s28 + $0x88] sm:$0xff] (%p5091_p5) }
 0x1dd   : > { %3860 = vst.msk [vmem:[%s5871_s28 + $0xa8] sm:$0xff] %vm242_vm1, %v4691_v32  ;;  %3948 = vst.msk [vmem:[%s5871_s28 + $0x1a8] sm:$0xff] %vm242_vm1, %v4707_v33  ;;  %v3443_v30 = vld [vmem:[%s5871_s28 + $0x80] sm:$0xff] (%p5091_p5) }
 0x1de   : > { %3859 = vst.msk [vmem:[%s5871_s28 + $0xa0] sm:$0xff] %vm242_vm1, %v4692_v36  ;;  %3947 = vst.msk [vmem:[%s5871_s28 + $0x1a0] sm:$0xff] %vm242_vm1, %v4708_v37  ;;  %v4538_v38 = vpop.f32.mrb[22].mxu0  ;;  %v4642_v39 = vpop.f32.mrb[22].mxu1 }
 0x1df   : > { %v4693_v40 = vadd.f32 %v4538_v38, %v5865_v12  ;;  %v4709_v41 = vadd.f32 %v4642_v39, %v5865_v12  ;;  %v2470_v42 = vpop.f32.mrb[23].mxu0  ;;  %v3163_v43 = vpop.f32.mrb[23].mxu1  ;;  %3432 = vst [vmem:[%s6077_s4 + $0x50] sm:$0xff] (%p5091_p5), %v3431_v24  ;;  %3434 = vst [vmem:[%s6077_s4 + $0x58] sm:$0xff] (%p5091_p5), %v3433_v25 }
 0x1e0   : > { %v4694_v44 = vadd.f32 %v5865_v12, %v2470_v42  ;;  %v4710_v45 = vadd.f32 %v5865_v12, %v3163_v43  ;;  %3436 = vst [vmem:[%s6077_s4 + $0x60] sm:$0xff] (%p5091_p5), %v3435_v26  ;;  %3438 = vst [vmem:[%s6077_s4 + $0x68] sm:$0xff] (%p5091_p5), %v3437_v27  ;;  %v3449_v33 = vld [vmem:[%s5871_s28 + $0x98] sm:$0xff] (%p5091_p5) }
 0x1e1   : > { %3862 = vst.msk [vmem:[%s5871_s28 + $0xb8] sm:$0xff] %vm242_vm1, %v4693_v40  ;;  %3950 = vst.msk [vmem:[%s5871_s28 + $0x1b8] sm:$0xff] %vm242_vm1, %v4709_v41  ;;  %v3447_v32 = vld [vmem:[%s5871_s28 + $0x90] sm:$0xff] (%p5091_p5) }
 0x1e2   : > { %3861 = vst.msk [vmem:[%s5871_s28 + $0xb0] sm:$0xff] %vm242_vm1, %v4694_v44  ;;  %3949 = vst.msk [vmem:[%s5871_s28 + $0x1b0] sm:$0xff] %vm242_vm1, %v4710_v45  ;;  %v4541_v46 = vpop.f32.mrb[24].mxu0  ;;  %v4645_v47 = vpop.f32.mrb[24].mxu1 }
 0x1e3   : > { %v4695_v48 = vadd.f32 %v4541_v46, %v5865_v12  ;;  %v4711_v49 = vadd.f32 %v4645_v47, %v5865_v12  ;;  %v2480_v50 = vpop.f32.mrb[25].mxu0  ;;  %v3173_v51 = vpop.f32.mrb[25].mxu1  ;;  %3440 = vst [vmem:[%s6077_s4 + $0x70] sm:$0xff] (%p5091_p5), %v3439_v28  ;;  %3442 = vst [vmem:[%s6077_s4 + $0x78] sm:$0xff] (%p5091_p5), %v3441_v29  ;;  %v3475_v46 = vld [vmem:[%s5871_s28 + $0x100] sm:$0xff] (%p5091_p5)  ;;  %v3477_v47 = vld [vmem:[%s5871_s28 + $0x108] sm:$0xff] (%p5091_p5) }
 0x1e4   : > { %v4696_v52 = vadd.f32 %v5865_v12, %v2480_v50  ;;  %v4712_v53 = vadd.f32 %v5865_v12, %v3173_v51  ;;  %3444 = vst [vmem:[%s6077_s4 + $0x100] sm:$0xff] (%p5091_p5), %v3443_v30  ;;  %3446 = vst [vmem:[%s6077_s4 + $0x108] sm:$0xff] (%p5091_p5), %v3445_v31  ;;  %v3453_v35 = vld [vmem:[%s5871_s28 + $0xa8] sm:$0xff] (%p5091_p5)  ;;  %v3483_v50 = vld [vmem:[%s5871_s28 + $0x120] sm:$0xff] (%p5091_p5) }
 0x1e5   : > { %3864 = vst.msk [vmem:[%s5871_s28 + $0xc8] sm:$0xff] %vm242_vm1, %v4695_v48  ;;  %3952 = vst.msk [vmem:[%s5871_s28 + $0x1c8] sm:$0xff] %vm242_vm1, %v4711_v49  ;;  %v3451_v34 = vld [vmem:[%s5871_s28 + $0xa0] sm:$0xff] (%p5091_p5)  ;;  %v3479_v48 = vld [vmem:[%s5871_s28 + $0x110] sm:$0xff] (%p5091_p5) }
 0x1e6   : > { %3863 = vst.msk [vmem:[%s5871_s28 + $0xc0] sm:$0xff] %vm242_vm1, %v4696_v52  ;;  %3951 = vst.msk [vmem:[%s5871_s28 + $0x1c0] sm:$0xff] %vm242_vm1, %v4712_v53  ;;  %v4544_v54 = vpop.f32.mrb[26].mxu0  ;;  %v4648_v55 = vpop.f32.mrb[26].mxu1  ;;  %v3481_v49 = vld [vmem:[%s5871_s28 + $0x118] sm:$0xff] (%p5091_p5)  ;;  %v3485_v51 = vld [vmem:[%s5871_s28 + $0x128] sm:$0xff] (%p5091_p5) }
 0x1e7   : > { %v4697_v56 = vadd.f32 %v4544_v54, %v5865_v12  ;;  %v4713_v57 = vadd.f32 %v4648_v55, %v5865_v12  ;;  %v2490_v58 = vpop.f32.mrb[27].mxu0  ;;  %v3183_v59 = vpop.f32.mrb[27].mxu1  ;;  %3448 = vst [vmem:[%s6077_s4 + $0x110] sm:$0xff] (%p5091_p5), %v3447_v32  ;;  %3450 = vst [vmem:[%s6077_s4 + $0x118] sm:$0xff] (%p5091_p5), %v3449_v33  ;;  %v3487_v52 = vld [vmem:[%s5871_s28 + $0x130] sm:$0xff] (%p5091_p5)  ;;  %v3489_v53 = vld [vmem:[%s5871_s28 + $0x138] sm:$0xff] (%p5091_p5) }
 0x1e8   : > { %v4698_v60 = vadd.f32 %v5865_v12, %v2490_v58  ;;  %v4714_v61 = vadd.f32 %v5865_v12, %v3183_v59  ;;  %3452 = vst [vmem:[%s6077_s4 + $0x120] sm:$0xff] (%p5091_p5), %v3451_v34  ;;  %v3457_v37 = vld [vmem:[%s5871_s28 + $0xb8] sm:$0xff] (%p5091_p5)  ;;  %3454 = vst [vmem:[%s6077_s4 + $0x128] sm:$0xff] (%p5091_p5), %v3453_v35  ;;  %v3491_v54 = vld [vmem:[%s5871_s28 + $0x140] sm:$0xff] (%p5091_p5) }
 0x1e9   : > { %3866 = vst.msk [vmem:[%s5871_s28 + $0xd8] sm:$0xff] %vm242_vm1, %v4697_v56  ;;  %3954 = vst.msk [vmem:[%s5871_s28 + $0x1d8] sm:$0xff] %vm242_vm1, %v4713_v57  ;;  %v3455_v36 = vld [vmem:[%s5871_s28 + $0xb0] sm:$0xff] (%p5091_p5)  ;;  %v3493_v55 = vld [vmem:[%s5871_s28 + $0x148] sm:$0xff] (%p5091_p5) }
 0x1ea   : > { %3865 = vst.msk [vmem:[%s5871_s28 + $0xd0] sm:$0xff] %vm242_vm1, %v4698_v60  ;;  %3953 = vst.msk [vmem:[%s5871_s28 + $0x1d0] sm:$0xff] %vm242_vm1, %v4714_v61  ;;  %v4547_v62 = vpop.f32.mrb[28].mxu0  ;;  %v4651_v63 = vpop.f32.mrb[28].mxu1  ;;  %v3495_v56 = vld [vmem:[%s5871_s28 + $0x150] sm:$0xff] (%p5091_p5)  ;;  %v3497_v57 = vld [vmem:[%s5871_s28 + $0x158] sm:$0xff] (%p5091_p5) }
 0x1eb   : > { %v4699_v0 = vadd.f32 %v4547_v62, %v5865_v12  ;;  %v4715_v1 = vadd.f32 %v4651_v63, %v5865_v12  ;;  %v2500_v2 = vpop.f32.mrb[29].mxu0  ;;  %v3193_v3 = vpop.f32.mrb[29].mxu1  ;;  %3456 = vst [vmem:[%s6077_s4 + $0x130] sm:$0xff] (%p5091_p5), %v3455_v36  ;;  %3458 = vst [vmem:[%s6077_s4 + $0x138] sm:$0xff] (%p5091_p5), %v3457_v37  ;;  %v3499_v58 = vld [vmem:[%s5871_s28 + $0x160] sm:$0xff] (%p5091_p5)  ;;  %v3501_v59 = vld [vmem:[%s5871_s28 + $0x168] sm:$0xff] (%p5091_p5) }
 0x1ec   : > { %v4700_v4 = vadd.f32 %v5865_v12, %v2500_v2  ;;  %v4716_v5 = vadd.f32 %v5865_v12, %v3193_v3  ;;  %3251 = sbr.rel (!%p5091_p5) target bundleno = 517 (0x205), region = 36  ;;  %v3461_v39 = vld [vmem:[%s5871_s28 + $0xc8] sm:$0xff] (%p5091_p5)  ;;  %3476 = vst [vmem:[%s6077_s4 + $0x200] sm:$0xff] (%p5091_p5), %v3475_v46  ;;  %3478 = vst [vmem:[%s6077_s4 + $0x208] sm:$0xff] (%p5091_p5), %v3477_v47  ;;  %v3503_v60 = vld [vmem:[%s5871_s28 + $0x170] sm:$0xff] (%p5091_p5) }
 0x1ed   : > { %3868 = vst.msk [vmem:[%s5871_s28 + $0xe8] sm:$0xff] %vm242_vm1, %v4699_v0  ;;  %3956 = vst.msk [vmem:[%s5871_s28 + $0x1e8] sm:$0xff] %vm242_vm1, %v4715_v1  ;;  %v3459_v38 = vld [vmem:[%s5871_s28 + $0xc0] sm:$0xff] (%p5091_p5)  ;;  %v3505_v61 = vld [vmem:[%s5871_s28 + $0x178] sm:$0xff] (%p5091_p5) }
 0x1ee   : > { %3867 = vst.msk [vmem:[%s5871_s28 + $0xe0] sm:$0xff] %vm242_vm1, %v4700_v4  ;;  %3955 = vst.msk [vmem:[%s5871_s28 + $0x1e0] sm:$0xff] %vm242_vm1, %v4716_v5  ;;  %v4550_v6 = vpop.f32.mrb[30].mxu0  ;;  %v4654_v7 = vpop.f32.mrb[30].mxu1  ;;  %v3507_v62 = vld [vmem:[%s5871_s28 + $0x180] sm:$0xff] (%p5091_p5)  ;;  %v3509_v63 = vld [vmem:[%s5871_s28 + $0x188] sm:$0xff] (%p5091_p5) }
 0x1ef   : > { %v4701_v8 = vadd.f32 %v4550_v6, %v5865_v12  ;;  %v4717_v9 = vadd.f32 %v4654_v7, %v5865_v12  ;;  %v2510_v10 = vpop.f32.mrb[31].mxu0  ;;  %v3203_v11 = vpop.f32.mrb[31].mxu1  ;;  %3460 = vst [vmem:[%s6077_s4 + $0x140] sm:$0xff] (%p5091_p5), %v3459_v38  ;;  %3462 = vst [vmem:[%s6077_s4 + $0x148] sm:$0xff] (%p5091_p5), %v3461_v39  ;;  %v3511_v0 = vld [vmem:[%s5871_s28 + $0x190] sm:$0xff] (%p5091_p5)  ;;  %v3513_v1 = vld [vmem:[%s5871_s28 + $0x198] sm:$0xff] (%p5091_p5) }
 0x1f0   : > { %v4702_v13 = vadd.f32 %v5865_v12, %v2510_v10  ;;  %v4718_v14 = vadd.f32 %v5865_v12, %v3203_v11  ;;  %v3411_v12 = vld [vmem:[%s5871_s28] sm:$0xff] (%p5091_p5)  ;;  %v3465_v41 = vld [vmem:[%s5871_s28 + $0xd8] sm:$0xff] (%p5091_p5)  ;;  %3480 = vst [vmem:[%s6077_s4 + $0x210] sm:$0xff] (%p5091_p5), %v3479_v48  ;;  %3482 = vst [vmem:[%s6077_s4 + $0x218] sm:$0xff] (%p5091_p5), %v3481_v49 }
 0x1f1   : > { %3870 = vst.msk [vmem:[%s5871_s28 + $0xf8] sm:$0xff] %vm242_vm1, %v4701_v8  ;;  %3958 = vst.msk [vmem:[%s5871_s28 + $0x1f8] sm:$0xff] %vm242_vm1, %v4717_v9  ;;  %v3463_v40 = vld [vmem:[%s5871_s28 + $0xd0] sm:$0xff] (%p5091_p5)  ;;  %v3515_v2 = vld [vmem:[%s5871_s28 + $0x1a0] sm:$0xff] (%p5091_p5) }
 0x1f2   : > { %3869 = vst.msk [vmem:[%s5871_s28 + $0xf0] sm:$0xff] %vm242_vm1, %v4702_v13  ;;  %3957 = vst.msk [vmem:[%s5871_s28 + $0x1f0] sm:$0xff] %vm242_vm1, %v4718_v14  ;;  %v3517_v3 = vld [vmem:[%s5871_s28 + $0x1a8] sm:$0xff] (%p5091_p5)  ;;  %v3519_v4 = vld [vmem:[%s5871_s28 + $0x1b0] sm:$0xff] (%p5091_p5) }
 0x1f3   : > { %3412 = vst [vmem:[%s6077_s4] sm:$0xff] %v3411_v12  ;;  %3464 = vst [vmem:[%s6077_s4 + $0x150] sm:$0xff] %v3463_v40  ;;  %v3521_v5 = vld [vmem:[%s5871_s28 + $0x1b8] sm:$0xff]  ;;  %v3523_v6 = vld [vmem:[%s5871_s28 + $0x1c0] sm:$0xff] }
 0x1f4   : > { %v3469_v43 = vld [vmem:[%s5871_s28 + $0xe8] sm:$0xff]  ;;  %3466 = vst [vmem:[%s6077_s4 + $0x158] sm:$0xff] %v3465_v41  ;;  %3484 = vst [vmem:[%s6077_s4 + $0x220] sm:$0xff] %v3483_v50  ;;  %v3527_v8 = vld [vmem:[%s5871_s28 + $0x1d0] sm:$0xff] }
 0x1f5   : > { %v3467_v42 = vld [vmem:[%s5871_s28 + $0xe0] sm:$0xff]  ;;  %3470 = vst [vmem:[%s6077_s4 + $0x168] sm:$0xff] %v3469_v43  ;;  %3486 = vst [vmem:[%s6077_s4 + $0x228] sm:$0xff] %v3485_v51  ;;  %v3525_v7 = vld [vmem:[%s5871_s28 + $0x1c8] sm:$0xff] }
 0x1f6   : > { %3468 = vst [vmem:[%s6077_s4 + $0x160] sm:$0xff] %v3467_v42  ;;  %3488 = vst [vmem:[%s6077_s4 + $0x230] sm:$0xff] %v3487_v52  ;;  %v3529_v9 = vld [vmem:[%s5871_s28 + $0x1d8] sm:$0xff]  ;;  %v3531_v10 = vld [vmem:[%s5871_s28 + $0x1e0] sm:$0xff] }
 0x1f7   : > { %3490 = vst [vmem:[%s6077_s4 + $0x238] sm:$0xff] %v3489_v53  ;;  %3492 = vst [vmem:[%s6077_s4 + $0x240] sm:$0xff] %v3491_v54  ;;  %v3533_v11 = vld [vmem:[%s5871_s28 + $0x1e8] sm:$0xff] }
 0x1f8   : > { %v3473_v45 = vld [vmem:[%s5871_s28 + $0xf8] sm:$0xff]  ;;  %3494 = vst [vmem:[%s6077_s4 + $0x248] sm:$0xff] %v3493_v55  ;;  %3496 = vst [vmem:[%s6077_s4 + $0x250] sm:$0xff] %v3495_v56 }
 0x1f9   : > { %v3471_v44 = vld [vmem:[%s5871_s28 + $0xf0] sm:$0xff]  ;;  %3474 = vst [vmem:[%s6077_s4 + $0x178] sm:$0xff] %v3473_v45  ;;  %3498 = vst [vmem:[%s6077_s4 + $0x258] sm:$0xff] %v3497_v57  ;;  %v3537_v14 = vld [vmem:[%s5871_s28 + $0x1f8] sm:$0xff] }
 0x1fa   : > { %3472 = vst [vmem:[%s6077_s4 + $0x170] sm:$0xff] %v3471_v44  ;;  %3500 = vst [vmem:[%s6077_s4 + $0x260] sm:$0xff] %v3499_v58  ;;  %v3535_v13 = vld [vmem:[%s5871_s28 + $0x1f0] sm:$0xff] }
 0x1fb   : > { %3502 = vst [vmem:[%s6077_s4 + $0x268] sm:$0xff] %v3501_v59  ;;  %3504 = vst [vmem:[%s6077_s4 + $0x270] sm:$0xff] %v3503_v60 }
 0x1fc   : > { %3506 = vst [vmem:[%s6077_s4 + $0x278] sm:$0xff] %v3505_v61  ;;  %3508 = vst [vmem:[%s6077_s4 + $0x300] sm:$0xff] %v3507_v62 }
 0x1fd   : > { %3510 = vst [vmem:[%s6077_s4 + $0x308] sm:$0xff] %v3509_v63  ;;  %3512 = vst [vmem:[%s6077_s4 + $0x310] sm:$0xff] %v3511_v0 }
 0x1fe   : > { %3514 = vst [vmem:[%s6077_s4 + $0x318] sm:$0xff] %v3513_v1  ;;  %3516 = vst [vmem:[%s6077_s4 + $0x320] sm:$0xff] %v3515_v2 }
 0x1ff   : > { %3518 = vst [vmem:[%s6077_s4 + $0x328] sm:$0xff] %v3517_v3  ;;  %3520 = vst [vmem:[%s6077_s4 + $0x330] sm:$0xff] %v3519_v4 }
 0x200   : > { %3522 = vst [vmem:[%s6077_s4 + $0x338] sm:$0xff] %v3521_v5  ;;  %3524 = vst [vmem:[%s6077_s4 + $0x340] sm:$0xff] %v3523_v6 }
 0x201   : > { %3526 = vst [vmem:[%s6077_s4 + $0x348] sm:$0xff] %v3525_v7  ;;  %3528 = vst [vmem:[%s6077_s4 + $0x350] sm:$0xff] %v3527_v8 }
 0x202   : > { %3530 = vst [vmem:[%s6077_s4 + $0x358] sm:$0xff] %v3529_v9  ;;  %3532 = vst [vmem:[%s6077_s4 + $0x360] sm:$0xff] %v3531_v10 }
 0x203   : > { %3534 = vst [vmem:[%s6077_s4 + $0x368] sm:$0xff] %v3533_v11  ;;  %3536 = vst [vmem:[%s6077_s4 + $0x370] sm:$0xff] %v3535_v13 }
 0x204   : > { %3538 = vst [vmem:[%s6077_s4 + $0x378] sm:$0xff] %v3537_v14 }
 0x205 PF: > { %s13_s18 = sadd.s32 1, %s5023_s18   ;;  %s6224_s12 = smov %s5003_s13 }
 0x206   : > { %p10_p11 = scmp.ge.s32.totalorder %s13_s18, 6   ;;  %s6225_s13 = smov %s5102_s27 }
 0x207   : > { %s6226_s14 = smov %s5015_s16  ;;  %s6227_s15 = smov %s5019_s17 }
 0x208   : > { %s6228_s16 = smov %s6231_s19  ;;  %s6229_s17 = smov %s6235_s20 }
 0x209   :  { %12 = sbr.rel (!%p10_p11) target bundleno = 4 (0x4), region = 118 }

</bundles_post_ra>
